<compile_context>
chip_gen: v5e
topology: v5e:2x2
jax: 0.10.0
libtpu: 0.0.40
codegen_flags: <defaults>
</compile_context>

<pallas_src>
import functools

import jax
import jax.numpy as jnp
from jax.experimental import pallas as pl
from jax.experimental.pallas import tpu as pltpu


def _round_up(x, m):
    return ((x + m - 1) // m) * m


def _vmem_limit_bytes():
    # Per-generation VMEM budget (v5e/v6e: 128 MiB, v7x: 64 MiB per TensorCore).
    try:
        info = pltpu.get_tpu_info()
        cap = int(getattr(info, "vmem_capacity_bytes", 128 * 1024 * 1024))
    except Exception:
        cap = 64 * 1024 * 1024  # conservative fallback (v7x physical per-TC VMEM)
    return min((cap * 3) // 4, 100 * 1024 * 1024)


_VMEM_LIMIT = _vmem_limit_bytes()


def _pick_tile_rows(hout, w, k1p, cmid_p, cout_p, itemsize, budget_bytes):
    """Largest output-row slab whose working set fits the VMEM budget."""
    weights = 2 * (k1p * cmid_p + 9 * cmid_p * cout_p + cmid_p + cout_p) * itemsize
    halo_elems = 2 * w + 16  # m1 rows beyond th*w (upper bound)
    fixed = weights + (2 * k1p + cmid_p) * halo_elems * itemsize + (1 << 20)
    # per output row: im2col block (x2 buffers) + mid scratch + out block (x2 buffers)
    row_cost = (2 * k1p + cmid_p + 2 * cout_p) * w * itemsize
    th = int((budget_bytes - fixed) // row_cost)
    return max(1, min(hout, th))


def _make_kernel(w, m2):
    offs = [i * w + j for i in range(3) for j in range(3)]

    def kernel(p1_ref, w1_ref, b1_ref, w2_ref, b2_ref, o_ref, mid_ref):
        # ---- conv1: one matmul over K = 9*cin (padded to 128); bias + ReLU fused into
        #      a single VMEM store (no broadcast materialization, no RMW).
        mid = jnp.dot(p1_ref[0], w1_ref[...], preferred_element_type=jnp.float32)
        mid_ref[...] = jnp.maximum(mid + b1_ref[...], 0.0).astype(mid_ref.dtype)

        # ---- conv2: 9 shifted taps (K = cmid_p, lane-dense) as ONE chained functional
        #      dot-accumulate expression; single store with bias + ReLU fused.
        acc = None
        for t, off in enumerate(offs):
            part = jnp.dot(mid_ref[pl.ds(off, m2), :], w2_ref[t],
                           preferred_element_type=jnp.float32)
            acc = part if acc is None else acc + part
        o_ref[0] = jnp.maximum(acc + b2_ref[...], 0.0).astype(o_ref.dtype)

    return kernel


def _prep_w1(w_oihw, k1p, cmid_p, dtype):
    co, ci = w_oihw.shape[0], w_oihw.shape[1]
    k = jnp.transpose(w_oihw.astype(jnp.float32), (2, 3, 1, 0)).reshape(9 * ci, co)
    return jnp.pad(k, ((0, k1p - 9 * ci), (0, cmid_p - co))).astype(dtype)


def _prep_w2(w_oihw, cin_p, cout_p, dtype):
    co, ci = w_oihw.shape[0], w_oihw.shape[1]
    k = jnp.transpose(w_oihw.astype(jnp.float32), (2, 3, 1, 0)).reshape(9, ci, co)
    return jnp.pad(k, ((0, 0), (0, cin_p - ci), (0, cout_p - co))).astype(dtype)


@functools.partial(jax.jit, static_argnames=("compute_dtype",))
def double_conv_forward(x_nchw, params, compute_dtype=jnp.float32):
    n, cin, h, w = x_nchw.shape
    cmid = params["w1"].shape[0]
    cout = params["w2"].shape[0]
    assert h >= 5 and w >= 5, "DoubleConv needs spatial dims >= 5 (two valid 3x3 convs)"

    hout, wout = h - 4, w - 4
    cmid_p = _round_up(cmid, 128)
    cout_p = _round_up(cout, 128)
    k1 = 9 * cin
    k1p = _round_up(k1, 128)
    itemsize = jnp.dtype(compute_dtype).itemsize

    # Row-slab size over final output rows from the per-generation VMEM budget.
    th = _pick_tile_rows(hout, w, k1p, cmid_p, cout_p, itemsize, _VMEM_LIMIT - (2 << 20))
    n_slabs = pl.cdiv(hout, th)
    if n * n_slabs < 2 and hout >= 2:       # keep >=2 grid steps so both v7x TCs get work
        th = pl.cdiv(hout, 2)
        n_slabs = pl.cdiv(hout, th)
    m2 = th * w                              # conv2 rows written per slab (flattened)
    m1 = _round_up((th + 2) * w + 2, 8)      # conv1 rows needed per slab (incl. halo)
    grid_n = n * n_slabs

    # ---- host-side layout prep (no heavy math): NCHW -> NHWC, pad rows, flatten spatial
    # row-major, and build per-slab im2col patches (9 taps folded into the K dim, halo rows
    # duplicated so slabs are disjoint -> input is auto-pipelined by BlockSpec).
    x_nhwc = jnp.transpose(x_nchw, (0, 2, 3, 1)).astype(compute_dtype)
    h_pad = pl.cdiv((n_slabs - 1) * th * w + m1 + 2 * w + 2, w)
    x_nhwc = jnp.pad(x_nhwc, ((0, 0), (0, h_pad - h), (0, 0), (0, 0)))
    x_flat = x_nhwc.reshape(n, h_pad * w, cin)

    offs = [i * w + j for i in range(3) for j in range(3)]
    slabs = []
    for s in range(n_slabs):
        base = s * th * w
        slabs.append(jnp.concatenate(
            [x_flat[:, base + o: base + o + m1, :] for o in offs], axis=-1))
    p1 = jnp.stack(slabs, axis=1)                                  # (n, n_slabs, m1, 9*cin)
    p1 = jnp.pad(p1, ((0, 0), (0, 0), (0, 0), (0, k1p - k1)))      # lane-dense K
    p1 = p1.reshape(grid_n, m1, k1p)

    w1p = _prep_w1(params["w1"], k1p, cmid_p, compute_dtype)       # (k1p, cmid_p)
    w2p = _prep_w2(params["w2"], cmid_p, cout_p, compute_dtype)    # (9, cmid_p, cout_p)
    b1p = jnp.pad(params["b1"].astype(jnp.float32), (0, cmid_p - cmid)).reshape(1, cmid_p)
    b2p = jnp.pad(params["b2"].astype(jnp.float32), (0, cout_p - cout)).reshape(1, cout_p)

    kernel = _make_kernel(w, m2)

    out_flat = pl.pallas_call(
        kernel,
        out_shape=jax.ShapeDtypeStruct((grid_n, m2, cout_p), jnp.float32),
        grid_spec=pltpu.PrefetchScalarGridSpec(
            num_scalar_prefetch=0,
            grid=(grid_n,),
            in_specs=[
                pl.BlockSpec((1, m1, k1p), lambda s: (s, 0, 0)),        # im2col patches
                pl.BlockSpec((k1p, cmid_p), lambda s: (0, 0)),          # w1 (resident)
                pl.BlockSpec((1, cmid_p), lambda s: (0, 0)),            # b1
                pl.BlockSpec((9, cmid_p, cout_p), lambda s: (0, 0, 0)),  # w2 (resident)
                pl.BlockSpec((1, cout_p), lambda s: (0, 0)),            # b2
            ],
            out_specs=pl.BlockSpec((1, m2, cout_p), lambda s: (s, 0, 0)),
            scratch_shapes=[
                pltpu.VMEM((m1, cmid_p), compute_dtype),  # conv1 activation (never hits HBM)
            ],
        ),
        compiler_params=pltpu.CompilerParams(
            dimension_semantics=("parallel",),
            vmem_limit_bytes=_VMEM_LIMIT,
        ),
    )(p1, w1p, b1p, w2p, b2p)

    # Un-flatten, drop padded rows / garbage right-edge columns / padded channels, -> NCHW.
    out = out_flat.reshape(n, n_slabs * th, w, cout_p)[:, :hout, :wout, :cout]
    return jnp.transpose(out, (0, 3, 1, 2)).astype(jnp.float32)


def init_double_conv_params(key, in_channels, out_channels, kernel_size=3):
    # Deterministic init mimicking PyTorch Conv2d's uniform(-1/sqrt(fan_in), 1/sqrt(fan_in)).
    k1, k2, k3, k4 = jax.random.split(key, 4)
    fan1 = in_channels * kernel_size * kernel_size
    fan2 = out_channels * kernel_size * kernel_size
    s1 = 1.0 / float(jnp.sqrt(fan1))
    s2 = 1.0 / float(jnp.sqrt(fan2))
    return {
        "w1": jax.random.uniform(k1, (out_channels, in_channels, kernel_size, kernel_size),
                                 jnp.float32, -s1, s1),
        "b1": jax.random.uniform(k2, (out_channels,), jnp.float32, -s1, s1),
        "w2": jax.random.uniform(k3, (out_channels, out_channels, kernel_size, kernel_size),
                                 jnp.float32, -s2, s2),
        "b2": jax.random.uniform(k4, (out_channels,), jnp.float32, -s2, s2),
    }


def _reference(x_nchw, params):
    def conv(x, wgt, b):
        y = jax.lax.conv_general_dilated(
            x, wgt, window_strides=(1, 1), padding="VALID",
            dimension_numbers=("NCHW", "OIHW", "NCHW"))
        return jax.nn.relu(y + b[None, :, None, None])
    return conv(conv(x_nchw, params["w1"], params["b1"]), params["w2"], params["b2"])


if __name__ == "__main__":
    key = jax.random.PRNGKey(0)
    kx, kp = jax.random.split(key)
    in_channels, out_channels = 4, 8
    x = jax.random.normal(kx, (2, in_channels, 16, 16), jnp.float32)
    params = init_double_conv_params(kp, in_channels, out_channels)

    out = jax.block_until_ready(double_conv_forward(x, params))
    assert out.shape == (2, out_channels, 12, 12), out.shape

    ref = _reference(x, params)
    assert jnp.allclose(out, ref, atol=1e-4, rtol=1e-4), \
        float(jnp.max(jnp.abs(out - ref)))
    print("KERNEL_OK")
</pallas_src>

<mosaic_0001>
module attributes {stable_mosaic.version = 11 : i64} {
  func.func @kernel(%arg0: i32, %arg1: memref<1x232x128xf32, #tpu.memory_space<vmem>>, %arg2: memref<128x128xf32, #tpu.memory_space<vmem>>, %arg3: memref<1x128xf32, #tpu.memory_space<vmem>>, %arg4: memref<9x128x128xf32, #tpu.memory_space<vmem>>, %arg5: memref<1x128xf32, #tpu.memory_space<vmem>>, %arg6: memref<1x192x128xf32, #tpu.memory_space<vmem>>, %arg7: memref<232x128xf32, #tpu.memory_space<vmem>>) attributes {dimension_semantics = [#tpu.dimension_semantics<parallel>], iteration_bounds = array<i64: 2>, scalar_prefetch = 0 : i64, scratch_operands = 1 : i64, tpu.core_type = #tpu.core_type<tc>, window_params = [{transform_indices = @transform_0, window_bounds = array<i64: 1, 232, 128>}, {pipeline_mode = #tpu.pipeline_mode<synchronous>, transform_indices = @transform_1, window_bounds = array<i64: 128, 128>}, {pipeline_mode = #tpu.pipeline_mode<synchronous>, transform_indices = @transform_2, window_bounds = array<i64: 1, 128>}, {pipeline_mode = #tpu.pipeline_mode<synchronous>, transform_indices = @transform_3, window_bounds = array<i64: 9, 128, 128>}, {pipeline_mode = #tpu.pipeline_mode<synchronous>, transform_indices = @transform_4, window_bounds = array<i64: 1, 128>}, {transform_indices = @transform_5, window_bounds = array<i64: 1, 192, 128>}]} {
    %c0 = arith.constant 0 : index
    %c0_0 = arith.constant 0 : index
    %c0_1 = arith.constant 0 : index
    %0 = vector.load %arg1[%c0, %c0_0, %c0_1] : memref<1x232x128xf32, #tpu.memory_space<vmem>>, vector<1x232x128xf32>
    %1 = vector.shape_cast %0 : vector<1x232x128xf32> to vector<232x128xf32>
    %c0_2 = arith.constant 0 : index
    %c0_3 = arith.constant 0 : index
    %2 = vector.load %arg2[%c0_2, %c0_3] : memref<128x128xf32, #tpu.memory_space<vmem>>, vector<128x128xf32>
    %cst = arith.constant dense<0.000000e+00> : vector<232x128xf32>
    %3 = tpu.matmul %1, %2, %cst {dimension_numbers = #tpu.dot_dimension_numbers<[1], [0], [0], [1], [0, 0, 1, 1], [], []>} : vector<232x128xf32>, vector<128x128xf32>, vector<232x128xf32> -> vector<232x128xf32>
    %c0_4 = arith.constant 0 : index
    %c0_5 = arith.constant 0 : index
    %4 = vector.load %arg3[%c0_4, %c0_5] : memref<1x128xf32, #tpu.memory_space<vmem>>, vector<1x128xf32>
    %5 = vector.broadcast %4 : vector<1x128xf32> to vector<232x128xf32>
    %6 = arith.addf %3, %5 : vector<232x128xf32>
    %cst_6 = arith.constant 0.000000e+00 : f32
    %7 = vector.broadcast %cst_6 : f32 to vector<232x128xf32>
    %8 = arith.maximumf %6, %7 : vector<232x128xf32>
    %c0_7 = arith.constant 0 : index
    %c0_8 = arith.constant 0 : index
    %9 = vector.load %arg7[%c0_7, %c0_8] : memref<232x128xf32, #tpu.memory_space<vmem>>, vector<232x128xf32>
    tpu.vector_store %arg7[%c0_7, %c0_8], %8 {strides = array<i32>} : memref<232x128xf32, #tpu.memory_space<vmem>>, vector<232x128xf32>,
    %c0_9 = arith.constant 0 : index
    %c0_10 = arith.constant 0 : index
    %10 = vector.load %arg7[%c0_9, %c0_10] : memref<232x128xf32, #tpu.memory_space<vmem>>, vector<192x128xf32>
    %c0_11 = arith.constant 0 : index
    %c0_12 = arith.constant 0 : index
    %c0_13 = arith.constant 0 : index
    %11 = vector.load %arg4[%c0_11, %c0_12, %c0_13] : memref<9x128x128xf32, #tpu.memory_space<vmem>>, vector<1x128x128xf32>
    %12 = vector.shape_cast %11 : vector<1x128x128xf32> to vector<128x128xf32>
    %cst_14 = arith.constant dense<0.000000e+00> : vector<192x128xf32>
    %13 = tpu.matmul %10, %12, %cst_14 {dimension_numbers = #tpu.dot_dimension_numbers<[1], [0], [0], [1], [0, 0, 1, 1], [], []>} : vector<192x128xf32>, vector<128x128xf32>, vector<192x128xf32> -> vector<192x128xf32>
    %c1 = arith.constant 1 : index
    %c0_15 = arith.constant 0 : index
    %14 = vector.load %arg7[%c1, %c0_15] : memref<232x128xf32, #tpu.memory_space<vmem>>, vector<192x128xf32>
    %c1_16 = arith.constant 1 : index
    %c0_17 = arith.constant 0 : index
    %c0_18 = arith.constant 0 : index
    %15 = vector.load %arg4[%c1_16, %c0_17, %c0_18] : memref<9x128x128xf32, #tpu.memory_space<vmem>>, vector<1x128x128xf32>
    %16 = vector.shape_cast %15 : vector<1x128x128xf32> to vector<128x128xf32>
    %cst_19 = arith.constant dense<0.000000e+00> : vector<192x128xf32>
    %17 = tpu.matmul %14, %16, %cst_19 {dimension_numbers = #tpu.dot_dimension_numbers<[1], [0], [0], [1], [0, 0, 1, 1], [], []>} : vector<192x128xf32>, vector<128x128xf32>, vector<192x128xf32> -> vector<192x128xf32>
    %18 = arith.addf %13, %17 : vector<192x128xf32>
    %c2 = arith.constant 2 : index
    %c0_20 = arith.constant 0 : index
    %19 = vector.load %arg7[%c2, %c0_20] : memref<232x128xf32, #tpu.memory_space<vmem>>, vector<192x128xf32>
    %c2_21 = arith.constant 2 : index
    %c0_22 = arith.constant 0 : index
    %c0_23 = arith.constant 0 : index
    %20 = vector.load %arg4[%c2_21, %c0_22, %c0_23] : memref<9x128x128xf32, #tpu.memory_space<vmem>>, vector<1x128x128xf32>
    %21 = vector.shape_cast %20 : vector<1x128x128xf32> to vector<128x128xf32>
    %cst_24 = arith.constant dense<0.000000e+00> : vector<192x128xf32>
    %22 = tpu.matmul %19, %21, %cst_24 {dimension_numbers = #tpu.dot_dimension_numbers<[1], [0], [0], [1], [0, 0, 1, 1], [], []>} : vector<192x128xf32>, vector<128x128xf32>, vector<192x128xf32> -> vector<192x128xf32>
    %23 = arith.addf %18, %22 : vector<192x128xf32>
    %c16 = arith.constant 16 : index
    %c0_25 = arith.constant 0 : index
    %24 = vector.load %arg7[%c16, %c0_25] : memref<232x128xf32, #tpu.memory_space<vmem>>, vector<192x128xf32>
    %c3 = arith.constant 3 : index
    %c0_26 = arith.constant 0 : index
    %c0_27 = arith.constant 0 : index
    %25 = vector.load %arg4[%c3, %c0_26, %c0_27] : memref<9x128x128xf32, #tpu.memory_space<vmem>>, vector<1x128x128xf32>
    %26 = vector.shape_cast %25 : vector<1x128x128xf32> to vector<128x128xf32>
    %cst_28 = arith.constant dense<0.000000e+00> : vector<192x128xf32>
    %27 = tpu.matmul %24, %26, %cst_28 {dimension_numbers = #tpu.dot_dimension_numbers<[1], [0], [0], [1], [0, 0, 1, 1], [], []>} : vector<192x128xf32>, vector<128x128xf32>, vector<192x128xf32> -> vector<192x128xf32>
    %28 = arith.addf %23, %27 : vector<192x128xf32>
    %c17 = arith.constant 17 : index
    %c0_29 = arith.constant 0 : index
    %29 = vector.load %arg7[%c17, %c0_29] : memref<232x128xf32, #tpu.memory_space<vmem>>, vector<192x128xf32>
    %c4 = arith.constant 4 : index
    %c0_30 = arith.constant 0 : index
    %c0_31 = arith.constant 0 : index
    %30 = vector.load %arg4[%c4, %c0_30, %c0_31] : memref<9x128x128xf32, #tpu.memory_space<vmem>>, vector<1x128x128xf32>
    %31 = vector.shape_cast %30 : vector<1x128x128xf32> to vector<128x128xf32>
    %cst_32 = arith.constant dense<0.000000e+00> : vector<192x128xf32>
    %32 = tpu.matmul %29, %31, %cst_32 {dimension_numbers = #tpu.dot_dimension_numbers<[1], [0], [0], [1], [0, 0, 1, 1], [], []>} : vector<192x128xf32>, vector<128x128xf32>, vector<192x128xf32> -> vector<192x128xf32>
    %33 = arith.addf %28, %32 : vector<192x128xf32>
    %c18 = arith.constant 18 : index
    %c0_33 = arith.constant 0 : index
    %34 = vector.load %arg7[%c18, %c0_33] : memref<232x128xf32, #tpu.memory_space<vmem>>, vector<192x128xf32>
    %c5 = arith.constant 5 : index
    %c0_34 = arith.constant 0 : index
    %c0_35 = arith.constant 0 : index
    %35 = vector.load %arg4[%c5, %c0_34, %c0_35] : memref<9x128x128xf32, #tpu.memory_space<vmem>>, vector<1x128x128xf32>
    %36 = vector.shape_cast %35 : vector<1x128x128xf32> to vector<128x128xf32>
    %cst_36 = arith.constant dense<0.000000e+00> : vector<192x128xf32>
    %37 = tpu.matmul %34, %36, %cst_36 {dimension_numbers = #tpu.dot_dimension_numbers<[1], [0], [0], [1], [0, 0, 1, 1], [], []>} : vector<192x128xf32>, vector<128x128xf32>, vector<192x128xf32> -> vector<192x128xf32>
    %38 = arith.addf %33, %37 : vector<192x128xf32>
    %c32 = arith.constant 32 : index
    %c0_37 = arith.constant 0 : index
    %39 = vector.load %arg7[%c32, %c0_37] : memref<232x128xf32, #tpu.memory_space<vmem>>, vector<192x128xf32>
    %c6 = arith.constant 6 : index
    %c0_38 = arith.constant 0 : index
    %c0_39 = arith.constant 0 : index
    %40 = vector.load %arg4[%c6, %c0_38, %c0_39] : memref<9x128x128xf32, #tpu.memory_space<vmem>>, vector<1x128x128xf32>
    %41 = vector.shape_cast %40 : vector<1x128x128xf32> to vector<128x128xf32>
    %cst_40 = arith.constant dense<0.000000e+00> : vector<192x128xf32>
    %42 = tpu.matmul %39, %41, %cst_40 {dimension_numbers = #tpu.dot_dimension_numbers<[1], [0], [0], [1], [0, 0, 1, 1], [], []>} : vector<192x128xf32>, vector<128x128xf32>, vector<192x128xf32> -> vector<192x128xf32>
    %43 = arith.addf %38, %42 : vector<192x128xf32>
    %c33 = arith.constant 33 : index
    %c0_41 = arith.constant 0 : index
    %44 = vector.load %arg7[%c33, %c0_41] : memref<232x128xf32, #tpu.memory_space<vmem>>, vector<192x128xf32>
    %c7 = arith.constant 7 : index
    %c0_42 = arith.constant 0 : index
    %c0_43 = arith.constant 0 : index
    %45 = vector.load %arg4[%c7, %c0_42, %c0_43] : memref<9x128x128xf32, #tpu.memory_space<vmem>>, vector<1x128x128xf32>
    %46 = vector.shape_cast %45 : vector<1x128x128xf32> to vector<128x128xf32>
    %cst_44 = arith.constant dense<0.000000e+00> : vector<192x128xf32>
    %47 = tpu.matmul %44, %46, %cst_44 {dimension_numbers = #tpu.dot_dimension_numbers<[1], [0], [0], [1], [0, 0, 1, 1], [], []>} : vector<192x128xf32>, vector<128x128xf32>, vector<192x128xf32> -> vector<192x128xf32>
    %48 = arith.addf %43, %47 : vector<192x128xf32>
    %c34 = arith.constant 34 : index
    %c0_45 = arith.constant 0 : index
    %49 = vector.load %arg7[%c34, %c0_45] : memref<232x128xf32, #tpu.memory_space<vmem>>, vector<192x128xf32>
    %c8 = arith.constant 8 : index
    %c0_46 = arith.constant 0 : index
    %c0_47 = arith.constant 0 : index
    %50 = vector.load %arg4[%c8, %c0_46, %c0_47] : memref<9x128x128xf32, #tpu.memory_space<vmem>>, vector<1x128x128xf32>
    %51 = vector.shape_cast %50 : vector<1x128x128xf32> to vector<128x128xf32>
    %cst_48 = arith.constant dense<0.000000e+00> : vector<192x128xf32>
    %52 = tpu.matmul %49, %51, %cst_48 {dimension_numbers = #tpu.dot_dimension_numbers<[1], [0], [0], [1], [0, 0, 1, 1], [], []>} : vector<192x128xf32>, vector<128x128xf32>, vector<192x128xf32> -> vector<192x128xf32>
    %53 = arith.addf %48, %52 : vector<192x128xf32>
    %c0_49 = arith.constant 0 : index
    %c0_50 = arith.constant 0 : index
    %54 = vector.load %arg5[%c0_49, %c0_50] : memref<1x128xf32, #tpu.memory_space<vmem>>, vector<1x128xf32>
    %55 = vector.broadcast %54 : vector<1x128xf32> to vector<192x128xf32>
    %56 = arith.addf %53, %55 : vector<192x128xf32>
    %cst_51 = arith.constant 0.000000e+00 : f32
    %57 = vector.broadcast %cst_51 : f32 to vector<192x128xf32>
    %58 = arith.maximumf %56, %57 : vector<192x128xf32>
    %c0_52 = arith.constant 0 : index
    %c0_53 = arith.constant 0 : index
    %c0_54 = arith.constant 0 : index
    %59 = vector.load %arg6[%c0_52, %c0_53, %c0_54] : memref<1x192x128xf32, #tpu.memory_space<vmem>>, vector<1x192x128xf32>
    %60 = vector.shape_cast %59 : vector<1x192x128xf32> to vector<192x128xf32>
    %61 = vector.shape_cast %58 : vector<192x128xf32> to vector<1x192x128xf32>
    tpu.vector_store %arg6[%c0_52, %c0_53, %c0_54], %61 {strides = array<i32>} : memref<1x192x128xf32, #tpu.memory_space<vmem>>, vector<1x192x128xf32>,
    return
  }
  func.func @transform_0(%arg0: i32) -> (i32, i32, i32) {
    %c0_i32 = arith.constant 0 : i32
    %c0_i32_0 = arith.constant 0 : i32
    %c0_i32_1 = arith.constant 0 : i32
    return %arg0, %c0_i32, %c0_i32_0 : i32, i32, i32
  }
  func.func @transform_1(%arg0: i32) -> (i32, i32) {
    %c0_i32 = arith.constant 0 : i32
    %c0_i32_0 = arith.constant 0 : i32
    %c0_i32_1 = arith.constant 0 : i32
    return %c0_i32, %c0_i32_0 : i32, i32
  }
  func.func @transform_2(%arg0: i32) -> (i32, i32) {
    %c0_i32 = arith.constant 0 : i32
    %c0_i32_0 = arith.constant 0 : i32
    %c0_i32_1 = arith.constant 0 : i32
    return %c0_i32, %c0_i32_0 : i32, i32
  }
  func.func @transform_3(%arg0: i32) -> (i32, i32, i32) {
    %c0_i32 = arith.constant 0 : i32
    %c0_i32_0 = arith.constant 0 : i32
    %c0_i32_1 = arith.constant 0 : i32
    %c0_i32_2 = arith.constant 0 : i32
    return %c0_i32, %c0_i32_0, %c0_i32_1 : i32, i32, i32
  }
  func.func @transform_4(%arg0: i32) -> (i32, i32) {
    %c0_i32 = arith.constant 0 : i32
    %c0_i32_0 = arith.constant 0 : i32
    %c0_i32_1 = arith.constant 0 : i32
    return %c0_i32, %c0_i32_0 : i32, i32
  }
  func.func @transform_5(%arg0: i32) -> (i32, i32, i32) {
    %c0_i32 = arith.constant 0 : i32
    %c0_i32_0 = arith.constant 0 : i32
    %c0_i32_1 = arith.constant 0 : i32
    return %arg0, %c0_i32, %c0_i32_0 : i32, i32, i32
  }
}

</mosaic_0001>

<bundles_post_ra>
// kernel: double_conv_forward.1
= control target key start
LH: loop header
LB: loop body
LE: loop exit
PB: predicated region body
PF: predicated region fallthrough
CT: control target
= control target key end

     0   :  { %s2139_s18 = smov 0   ;;  %s3435_s0 = inlined_call_operand.vmem [shape: f32[2,232,128], index: 0, kind: input, shape index: {}]   ;;  %s3436_s1 = inlined_call_operand.vmem [shape: f32[128,128], index: 1, kind: input, shape index: {}]   ;;  %s3437_s2 = inlined_call_operand.vmem [shape: f32[1,128], index: 2, kind: input, shape index: {}]   ;;  %s3438_s3 = inlined_call_operand.vmem [shape: f32[9,128,128], index: 3, kind: input, shape index: {}]   ;;  %s3439_s4 = inlined_call_operand.vmem [shape: f32[1,128], index: 4, kind: input, shape index: {}]   ;;  %s3440_s5 = inlined_call_operand.vmem [shape: f32[2,192,128], index: 5, kind: output, shape index: {}]  }
   0x1 LB: > { %s1904_s19 = sadd.s32 4294967295, %s2107_s18   ;;  %p1908_p0 = scmp.ge.s32.totalorder %s2107_s18, 1  ;;  %s2107_s18 = sphi %s2139_s18, %s15_s18  }
   0x2   : > { %p187_p1 = scmp.lt.s32.totalorder %s2107_s18, 3 }
   0x4   : > { %p188_p2 = pnand %p1908_p0, %p187_p1 }
   0x6   : > { %191 = sbr.rel (%p188_p2) target bundleno = 908 (0x38c), region = 40 }
   0xb   : > { %v269_v0 = vld [vmem:[%s3436_s1 + $0x78] sm:$0xff]  ;;  %v268_v1 = vld [vmem:[%s3436_s1 + $0x70] sm:$0xff]  ;;  %v267_v2 = vld [vmem:[%s3436_s1 + $0x68] sm:$0xff]  ;;  %p215_p3 = scmp.lt.s32.totalorder %s1904_s19, 1 }
   0xc   : > { %274 = vmatpush.msra.mxu0 %v269_v0  ;;  %v266_v3 = vld [vmem:[%s3436_s1 + $0x60] sm:$0xff]  ;;  %v265_v4 = vld [vmem:[%s3436_s1 + $0x58] sm:$0xff]  ;;  %v264_v5 = vld [vmem:[%s3436_s1 + $0x50] sm:$0xff] }
   0xd   : > { %v263_v6 = vld [vmem:[%s3436_s1 + $0x48] sm:$0xff]  ;;  %v262_v7 = vld [vmem:[%s3436_s1 + $0x40] sm:$0xff]  ;;  %v261_v8 = vld [vmem:[%s3436_s1 + $0x38] sm:$0xff]  ;;  %s3519_s19 = smov (!%p215_p3, %s1904_s19), 1 }
   0xe   : > { %275 = vmatpush.msra.mxu0 %v268_v1  ;;  %v260_v9 = vld [vmem:[%s3436_s1 + $0x30] sm:$0xff]  ;;  %v259_v10 = vld [vmem:[%s3436_s1 + $0x28] sm:$0xff]  ;;  %v258_v11 = vld [vmem:[%s3436_s1 + $0x20] sm:$0xff]  ;;  %s2089_s23 = smul.u32 232, %s3519_s19 }
   0xf   : > { %v257_v12 = vld [vmem:[%s3436_s1 + $0x18] sm:$0xff]  ;;  %v256_v13 = vld [vmem:[%s3436_s1 + $0x10] sm:$0xff]  ;;  %v255_v14 = vld [vmem:[%s3436_s1 + $0x8] sm:$0xff]  ;;  %s2090_s29 = smul.u32 192, %s3519_s19 }
  0x10   : > { %276 = vmatpush.msra.mxu0 %v267_v2  ;;  %s2198_s30 = scalar_lea.vmem %s3435_s0, %s2089_s23  ;;  %v254_v15 = vld [vmem:[%s3436_s1] sm:$0xff]  ;;  %v1926_v27 = vld [vmem:[%s3438_s3 + $0xf8] sm:$0xff]  ;;  %v1925_v28 = vld [vmem:[%s3438_s3 + $0xf0] sm:$0xff] }
  0x11   : > { %v225_v16 = vld [vmem:[%s2198_s30] sm:$0xff]  ;;  %v226_v17 = vld [vmem:[%s2198_s30 + $0x8] sm:$0xff]  ;;  %v227_v18 = vld [vmem:[%s2198_s30 + $0x10] sm:$0xff]  ;;  %517 = vmatpush.msra.mxu1 %v1926_v27  ;;  %2041 = vmatpush.msra.mxu3 %v1926_v27  ;;  %s3357_s8 = scalar_lea.vmem %s3440_s5, %s2090_s29 }
  0x12   : > { %277 = vmatpush.msra.mxu0 %v266_v3  ;;  %v228_v19 = vld [vmem:[%s2198_s30 + $0x18] sm:$0xff]  ;;  %v229_v20 = vld [vmem:[%s2198_s30 + $0x20] sm:$0xff]  ;;  %v230_v21 = vld [vmem:[%s2198_s30 + $0x28] sm:$0xff] }
  0x13   : > { %v231_v22 = vld [vmem:[%s2198_s30 + $0x30] sm:$0xff]  ;;  %v232_v23 = vld [vmem:[%s2198_s30 + $0x38] sm:$0xff]  ;;  %v233_v24 = vld [vmem:[%s2198_s30 + $0x40] sm:$0xff]  ;;  %518 = vmatpush.msra.mxu1 %v1925_v28  ;;  %2042 = vmatpush.msra.mxu3 %v1925_v28 }
  0x14   : > { %278 = vmatpush.msra.mxu0 %v265_v4  ;;  %v234_v25 = vld [vmem:[%s2198_s30 + $0x48] sm:$0xff]  ;;  %v235_v26 = vld [vmem:[%s2198_s30 + $0x50] sm:$0xff]  ;;  %v236_v30 = vld [vmem:[%s2198_s30 + $0x58] sm:$0xff] }
  0x15   : > { %v1924_v29 = vld [vmem:[%s3438_s3 + $0xe8] sm:$0xff]  ;;  %v1923_v31 = vld [vmem:[%s3438_s3 + $0xe0] sm:$0xff]  ;;  %v1922_v32 = vld [vmem:[%s3438_s3 + $0xd8] sm:$0xff] }
  0x16   : > { %279 = vmatpush.msra.mxu0 %v264_v5  ;;  %519 = vmatpush.msra.mxu1 %v1924_v29  ;;  %v1921_v33 = vld [vmem:[%s3438_s3 + $0xd0] sm:$0xff]  ;;  %v237_v34 = vld [vmem:[%s2198_s30 + $0x60] sm:$0xff]  ;;  %v1920_v35 = vld [vmem:[%s3438_s3 + $0xc8] sm:$0xff] }
  0x17   : > { %2043 = vmatpush.msra.mxu3 %v1924_v29  ;;  %v1919_v36 = vld [vmem:[%s3438_s3 + $0xc0] sm:$0xff]  ;;  %v1918_v37 = vld [vmem:[%s3438_s3 + $0xb8] sm:$0xff]  ;;  %v1917_v38 = vld [vmem:[%s3438_s3 + $0xb0] sm:$0xff] }
  0x18   : > { %280 = vmatpush.msra.mxu0 %v263_v6  ;;  %520 = vmatpush.msra.mxu1 %v1923_v31  ;;  %v238_v39 = vld [vmem:[%s2198_s30 + $0x68] sm:$0xff]  ;;  %v1915_v41 = vld [vmem:[%s3438_s3 + $0xa0] sm:$0xff]  ;;  %v1914_v42 = vld [vmem:[%s3438_s3 + $0x98] sm:$0xff] }
  0x19   : > { %2044 = vmatpush.msra.mxu3 %v1923_v31  ;;  %v1916_v40 = vld [vmem:[%s3438_s3 + $0xa8] sm:$0xff]  ;;  %v1913_v43 = vld [vmem:[%s3438_s3 + $0x90] sm:$0xff]  ;;  %v1911_v46 = vld [vmem:[%s3438_s3 + $0x80] sm:$0xff] }
  0x1a   : > { %281 = vmatpush.msra.mxu0 %v262_v7  ;;  %521 = vmatpush.msra.mxu1 %v1922_v32  ;;  %v239_v44 = vld [vmem:[%s2198_s30 + $0x70] sm:$0xff]  ;;  %v1912_v45 = vld [vmem:[%s3438_s3 + $0x88] sm:$0xff]  ;;  %v240_v47 = vld [vmem:[%s2198_s30 + $0x78] sm:$0xff] }
  0x1b   : > { %2045 = vmatpush.msra.mxu3 %v1922_v32  ;;  %v2270_v48 = vld [vmem:[%s3437_s2] ss:$0 sm:$0xff]  ;;  %v242_v54 = vld [vmem:[%s2198_s30 + $0x88] sm:$0xff]  ;;  %v243_v58 = vld [vmem:[%s2198_s30 + $0x90] sm:$0xff] }
  0x1c   : > { %282 = vmatpush.msra.mxu0 %v261_v8  ;;  %522 = vmatpush.msra.mxu1 %v1921_v33  ;;  %v241_v50 = vld [vmem:[%s2198_s30 + $0x80] sm:$0xff]  ;;  %v475_v62 = vld [vmem:[%s3438_s3 + $0x78] sm:$0xff]  ;;  %v474_v63 = vld [vmem:[%s3438_s3 + $0x70] sm:$0xff] }
  0x1d   : > { %2046 = vmatpush.msra.mxu3 %v1921_v33  ;;  %2057 = vmatpush.msra.mxu2 %v475_v62  ;;  %v244_v1 = vld [vmem:[%s2198_s30 + $0x98] sm:$0xff]  ;;  %v473_v3 = vld [vmem:[%s3438_s3 + $0x68] sm:$0xff]  ;;  %v472_v5 = vld [vmem:[%s3438_s3 + $0x60] sm:$0xff] }
  0x1e   : > { %283 = vmatpush.msra.mxu0 %v260_v9  ;;  %523 = vmatpush.msra.mxu1 %v1920_v35  ;;  %v471_v7 = vld [vmem:[%s3438_s3 + $0x58] sm:$0xff]  ;;  %v470_v8 = vld [vmem:[%s3438_s3 + $0x50] sm:$0xff]  ;;  %v460_v32 = vld [vmem:[%s3438_s3] sm:$0xff] }
  0x1f   : > { %2047 = vmatpush.msra.mxu3 %v1920_v35  ;;  %2058 = vmatpush.msra.mxu2 %v474_v63  ;;  %v247_v28 = vld [vmem:[%s2198_s30 + $0xb0] sm:$0xff]  ;;  %v248_v35 = vld [vmem:[%s2198_s30 + $0xb8] sm:$0xff] }
  0x20   : > { %284 = vmatpush.msra.mxu0 %v259_v10  ;;  %524 = vmatpush.msra.mxu1 %v1919_v36  ;;  %v245_v10 = vld [vmem:[%s2198_s30 + $0xa0] sm:$0xff] }
  0x21   : > { %2048 = vmatpush.msra.mxu3 %v1919_v36  ;;  %2059 = vmatpush.msra.mxu2 %v473_v3 }
  0x22   : > { %285 = vmatpush.msra.mxu0 %v258_v11  ;;  %525 = vmatpush.msra.mxu1 %v1918_v37 }
  0x23   : > { %2049 = vmatpush.msra.mxu3 %v1918_v37  ;;  %2060 = vmatpush.msra.mxu2 %v472_v5 }
  0x24   : > { %286 = vmatpush.msra.mxu0 %v257_v12  ;;  %526 = vmatpush.msra.mxu1 %v1917_v38  ;;  %v469_v12 = vld [vmem:[%s3438_s3 + $0x48] sm:$0xff] }
  0x25   : > { %2050 = vmatpush.msra.mxu3 %v1917_v38  ;;  %2061 = vmatpush.msra.mxu2 %v471_v7 }
  0x26   : > { %287 = vmatpush.msra.mxu0 %v256_v13  ;;  %527 = vmatpush.msra.mxu1 %v1916_v40 }
  0x27   : > { %2051 = vmatpush.msra.mxu3 %v1916_v40  ;;  %2062 = vmatpush.msra.mxu2 %v470_v8  ;;  %v249_v40 = vld [vmem:[%s2198_s30 + $0xc0] sm:$0xff] }
  0x28   : > { %288 = vmatpush.msra.mxu0 %v255_v14  ;;  %528 = vmatpush.msra.mxu1 %v1915_v41  ;;  %v468_v14 = vld [vmem:[%s3438_s3 + $0x40] sm:$0xff] }
  0x29   : > { %2052 = vmatpush.msra.mxu3 %v1915_v41  ;;  %2063 = vmatpush.msra.mxu2 %v469_v12 }
  0x2a   : > { %289 = vmatpush.msra.mxu0 %v254_v15  ;;  %529 = vmatpush.msra.mxu1 %v1914_v42 }
  0x2b   : > { %290 = vmatmul.f32.vlgmr.msra.gmra.mxu0 %v225_v16  ;;  %2053 = vmatpush.msra.mxu3 %v1914_v42  ;;  %v467_v16 = vld [vmem:[%s3438_s3 + $0x38] sm:$0xff] }
  0x2c   : > { %530 = vmatpush.msra.mxu1 %v1913_v43  ;;  %606 = vmatpush.msrb.mxu0 %v475_v62  ;;  %v251_v62 = vld [vmem:[%s2198_s30 + $0xd0] sm:$0xff] }
  0x2d   : > { %2054 = vmatpush.msra.mxu3 %v1913_v43  ;;  %2064 = vmatpush.msra.mxu2 %v468_v14 }
  0x2e   : > { %531 = vmatpush.msra.mxu1 %v1912_v45  ;;  %607 = vmatpush.msrb.mxu0 %v474_v63 }
  0x2f   : > { %2055 = vmatpush.msra.mxu3 %v1912_v45  ;;  %2065 = vmatpush.msra.mxu2 %v467_v16  ;;  %v1957_v45 = vld [vmem:[%s3438_s3 + $0x1f0] sm:$0xff] }
  0x30   : > { %532 = vmatpush.msra.mxu1 %v1911_v46  ;;  %608 = vmatpush.msrb.mxu0 %v473_v3 }
  0x31   : > { %2056 = vmatpush.msra.mxu3 %v1911_v46 }
  0x32   : > { %609 = vmatpush.msrb.mxu0 %v472_v5  ;;  %v1974_v5 = vld [vmem:[%s3438_s3 + $0x278] sm:$0xff] }
  0x33   : > { %293 = vmatmul.f32.gmra.mxu0 %v226_v17  ;;  %v466_v17 = vld [vmem:[%s3438_s3 + $0x30] sm:$0xff] }
  0x34   : > { %610 = vmatpush.msrb.mxu0 %v471_v7  ;;  %2066 = vmatpush.msra.mxu2 %v466_v17  ;;  %v1949_v7 = vld [vmem:[%s3438_s3 + $0x1b0] sm:$0xff] }
  0x36   : > { %611 = vmatpush.msrb.mxu0 %v470_v8 }
  0x38   : > { %612 = vmatpush.msrb.mxu0 %v469_v12 }
  0x3a   : > { %613 = vmatpush.msrb.mxu0 %v468_v14  ;;  %v1947_v14 = vld [vmem:[%s3438_s3 + $0x1a0] sm:$0xff] }
  0x3b   : > { %296 = vmatmul.f32.gmra.mxu0 %v227_v18 }
  0x3c   : > { %614 = vmatpush.msrb.mxu0 %v467_v16 }
  0x3e   : > { %615 = vmatpush.msrb.mxu0 %v466_v17  ;;  %v1973_v17 = vld [vmem:[%s3438_s3 + $0x270] sm:$0xff] }
  0x43   : > { %299 = vmatmul.f32.gmra.mxu0 %v228_v19  ;;  %v246_v19 = vld [vmem:[%s2198_s30 + $0xa8] sm:$0xff] }
  0x4b   : > { %302 = vmatmul.f32.gmra.mxu0 %v229_v20 }
  0x53   : > { %305 = vmatmul.f32.gmra.mxu0 %v230_v21  ;;  %v465_v21 = vld [vmem:[%s3438_s3 + $0x28] sm:$0xff] }
  0x54   : > { %2067 = vmatpush.msra.mxu2 %v465_v21  ;;  %616 = vmatpush.msrb.mxu0 %v465_v21 }
  0x5b   : > { %308 = vmatmul.f32.gmra.mxu0 %v231_v22 }
  0x63   : > { %311 = vmatmul.f32.gmra.mxu0 %v232_v23  ;;  %v464_v23 = vld [vmem:[%s3438_s3 + $0x20] sm:$0xff] }
  0x64   : > { %2068 = vmatpush.msra.mxu2 %v464_v23  ;;  %617 = vmatpush.msrb.mxu0 %v464_v23  ;;  %v253_v23 = vld [vmem:[%s2198_s30 + $0xe0] sm:$0xff] }
  0x6b   : > { %314 = vmatmul.f32.gmra.mxu0 %v233_v24 }
  0x73   : > { %317 = vmatmul.f32.gmra.mxu0 %v234_v25  ;;  %v463_v25 = vld [vmem:[%s3438_s3 + $0x18] sm:$0xff] }
  0x74   : > { %2069 = vmatpush.msra.mxu2 %v463_v25  ;;  %618 = vmatpush.msrb.mxu0 %v463_v25 }
  0x7b   : > { %320 = vmatmul.f32.gmra.mxu0 %v235_v26  ;;  %v462_v26 = vld [vmem:[%s3438_s3 + $0x10] sm:$0xff] }
  0x7c   : > { %2070 = vmatpush.msra.mxu2 %v462_v26  ;;  %619 = vmatpush.msrb.mxu0 %v462_v26  ;;  %v1944_v26 = vld [vmem:[%s3438_s3 + $0x188] sm:$0xff] }
  0x83   : > { %323 = vmatmul.f32.gmra.mxu0 %v236_v30  ;;  %v461_v30 = vld [vmem:[%s3438_s3 + $0x8] sm:$0xff] }
  0x84   : > { %2071 = vmatpush.msra.mxu2 %v461_v30  ;;  %620 = vmatpush.msrb.mxu0 %v461_v30  ;;  %v1942_v30 = vld [vmem:[%s3438_s3 + $0x178] sm:$0xff] }
  0x85   : > { %736 = vmatpush.msrb.mxu3 %v1942_v30 }
  0x86   : > { %2072 = vmatpush.msra.mxu2 %v460_v32  ;;  %621 = vmatpush.msrb.mxu0 %v460_v32  ;;  %v1971_v32 = vld [vmem:[%s3438_s3 + $0x260] sm:$0xff] }
  0x88   : > { %1044 = vmatpush.msrb.mxu2 %v1974_v5  ;;  %v2551_v5 = vld [vmem:[%s3438_s3 + $0x368] sm:$0xff] }
  0x8a   : > { %1045 = vmatpush.msrb.mxu2 %v1973_v17 }
  0x8b   : > { %326 = vmatmul.f32.gmra.mxu0 %v237_v34 }
  0x93   : > { %329 = vmatmul.f32.gmra.mxu0 %v238_v39 }
  0x9b   : > { %332 = vmatmul.f32.gmra.mxu0 %v239_v44  ;;  %v1958_v44 = vld [vmem:[%s3438_s3 + $0x1f8] sm:$0xff] }
  0x9c   : > { %890 = vmatpush.msrb.mxu1 %v1958_v44 }
  0x9e   : > { %891 = vmatpush.msrb.mxu1 %v1957_v45 }
  0xa3   : > { %335 = vmatmul.f32.gmra.mxu0 %v240_v47  ;;  %v250_v47 = vld [vmem:[%s2198_s30 + $0xc8] sm:$0xff] }
  0xa8   : > { %v291_v49 = vpop.f32.mrf.mxu0 }
  0xa9   : > { %v2274_v51 = vadd.f32 %v2270_v48, %v291_v49 }
  0xab   : > { %v378_v52 = vmax.f32 %v2274_v51, 0.0  ;;  %338 = vmatmul.f32.gmra.mxu0 %v241_v50  ;;  %v1956_v50 = vld [vmem:[%s3438_s3 + $0x1e8] sm:$0xff] }
  0xac   : > { %892 = vmatpush.msrb.mxu1 %v1956_v50  ;;  %v1940_v51 = vld [vmem:[%s3438_s3 + $0x168] sm:$0xff] }
  0xad   : > { %407 = vst [vmem:[#allocation2] sm:$0xff] %v378_v52 }
  0xb0   : > { %v294_v53 = vpop.f32.mrf.mxu0 }
  0xb1   : > { %v2281_v55 = vadd.f32 %v2270_v48, %v294_v53 }
  0xb3   : > { %v379_v56 = vmax.f32 %v2281_v55, 0.0  ;;  %341 = vmatmul.f32.gmra.mxu0 %v242_v54  ;;  %v1955_v54 = vld [vmem:[%s3438_s3 + $0x1e0] sm:$0xff] }
  0xb4   : > { %893 = vmatpush.msrb.mxu1 %v1955_v54 }
  0xb5   : > { %408 = vst [vmem:[#allocation2 + $0x8] sm:$0xff] %v379_v56 }
  0xb8   : > { %v297_v57 = vpop.f32.mrf.mxu0 }
  0xb9   : > { %v298_v59 = vadd.f32 %v2270_v48, %v297_v57 }
  0xbb   : > { %v2288_v60 = vmax.f32 %v298_v59, 0.0  ;;  %344 = vmatmul.f32.gmra.mxu0 %v243_v58  ;;  %v1954_v58 = vld [vmem:[%s3438_s3 + $0x1d8] sm:$0xff]  ;;  %v1953_v59 = vld [vmem:[%s3438_s3 + $0x1d0] sm:$0xff] }
  0xbc   : > { %v476_v61 = vld [vmem:[#allocation2 + $0x1] sm:$0xff]  ;;  %894 = vmatpush.msrb.mxu1 %v1954_v58  ;;  %v2526_v58 = vld [vmem:[%s3438_s3 + $0x378] sm:$0xff] }
  0xbd   : > { %409 = vst [vmem:[#allocation2 + $0x10] sm:$0xff] %v2288_v60  ;;  %533 = vmatmul.f32.vlgmr.msra.gmra.mxu1 %v476_v61  ;;  %1352 = vmatpush.msra.mxu0 %v2526_v58 }
  0xbe   : > { %895 = vmatpush.msrb.mxu1 %v1953_v59  ;;  %v1938_v59 = vld [vmem:[%s3438_s3 + $0x158] sm:$0xff] }
  0xc0   : > { %v300_v0 = vpop.f32.mrf.mxu0 }
  0xc1   : > { %v301_v2 = vadd.f32 %v2270_v48, %v300_v0  ;;  %v1952_v0 = vld [vmem:[%s3438_s3 + $0x1c8] sm:$0xff] }
  0xc2   : > { %896 = vmatpush.msrb.mxu1 %v1952_v0 }
  0xc3   : > { %v2302_v4 = vmax.f32 %v301_v2, 0.0  ;;  %347 = vmatmul.f32.gmra.mxu0 %v244_v1  ;;  %v1951_v2 = vld [vmem:[%s3438_s3 + $0x1c0] sm:$0xff] }
  0xc4   : > { %v477_v6 = vld [vmem:[#allocation2 + $0x9] sm:$0xff]  ;;  %897 = vmatpush.msrb.mxu1 %v1951_v2 }
  0xc5   : > { %410 = vst [vmem:[#allocation2 + $0x18] sm:$0xff] %v2302_v4  ;;  %536 = vmatmul.f32.gmra.mxu1 %v477_v6  ;;  %v1950_v6 = vld [vmem:[%s3438_s3 + $0x1b8] sm:$0xff] }
  0xc6   : > { %898 = vmatpush.msrb.mxu1 %v1950_v6 }
  0xc8   : > { %v303_v9 = vpop.f32.mrf.mxu0  ;;  %899 = vmatpush.msrb.mxu1 %v1949_v7  ;;  %v2559_v7 = vld [vmem:[%s3438_s3 + $0x360] sm:$0xff] }
  0xc9   : > { %v304_v11 = vadd.f32 %v2270_v48, %v303_v9  ;;  %v252_v9 = vld [vmem:[%s2198_s30 + $0xd8] sm:$0xff] }
  0xcb   : > { %v2319_v13 = vmax.f32 %v304_v11, 0.0  ;;  %350 = vmatmul.f32.gmra.mxu0 %v245_v10  ;;  %v1948_v11 = vld [vmem:[%s3438_s3 + $0x1a8] sm:$0xff] }
  0xcc   : > { %v2324_v15 = vld [vmem:[#allocation2 + $0x11] sm:$0xff]  ;;  %900 = vmatpush.msrb.mxu1 %v1948_v11 }
  0xcd   : > { %411 = vst [vmem:[#allocation2 + $0x20] sm:$0xff] %v2319_v13  ;;  %539 = vmatmul.f32.gmra.mxu1 %v2324_v15  ;;  %v2576_v11 = vld [vmem:[%s3438_s3 + $0x358] sm:$0xff] }
  0xce   : > { %901 = vmatpush.msrb.mxu1 %v1947_v14 }
  0xd0   : > { %v306_v18 = vpop.f32.mrf.mxu0 }
  0xd1   : > { %v307_v20 = vadd.f32 %v2270_v48, %v306_v18  ;;  %v1946_v18 = vld [vmem:[%s3438_s3 + $0x198] sm:$0xff] }
  0xd2   : > { %902 = vmatpush.msrb.mxu1 %v1946_v18  ;;  %v2590_v18 = vld [vmem:[%s3438_s3 + $0x348] sm:$0xff] }
  0xd3   : > { %v2339_v22 = vmax.f32 %v307_v20, 0.0  ;;  %353 = vmatmul.f32.gmra.mxu0 %v246_v19  ;;  %v1972_v19 = vld [vmem:[%s3438_s3 + $0x268] sm:$0xff]  ;;  %v1945_v20 = vld [vmem:[%s3438_s3 + $0x190] sm:$0xff] }
  0xd4   : > { %v2344_v24 = vld [vmem:[#allocation2 + $0x19] sm:$0xff]  ;;  %1046 = vmatpush.msrb.mxu2 %v1972_v19  ;;  %903 = vmatpush.msrb.mxu1 %v1945_v20 }
  0xd5   : > { %412 = vst [vmem:[#allocation2 + $0x28] sm:$0xff] %v2339_v22  ;;  %542 = vmatmul.f32.gmra.mxu1 %v2344_v24 }
  0xd6   : > { %904 = vmatpush.msrb.mxu1 %v1944_v26  ;;  %1047 = vmatpush.msrb.mxu2 %v1971_v32  ;;  %v1934_v26 = vld [vmem:[%s3438_s3 + $0x138] sm:$0xff]  ;;  %v2628_v32 = vld [vmem:[%s3438_s3 + $0x330] sm:$0xff] }
  0xd7   : > { %3459 = vst [vmem:[#allocation3_spill] sm:$0xff] %v2628_v32 }
  0xd8   : > { %v309_v27 = vpop.f32.mrf.mxu0 }
  0xd9   : > { %v310_v29 = vadd.f32 %v2270_v48, %v309_v27 }
  0xdb   : > { %v2359_v31 = vmax.f32 %v310_v29, 0.0  ;;  %356 = vmatmul.f32.gmra.mxu0 %v247_v28  ;;  %v1943_v28 = vld [vmem:[%s3438_s3 + $0x180] sm:$0xff] }
  0xdc   : > { %v2364_v33 = vld [vmem:[#allocation2 + $0x21] sm:$0xff]  ;;  %905 = vmatpush.msrb.mxu1 %v1943_v28  ;;  %v2620_v28 = vld [vmem:[%s3438_s3 + $0x338] sm:$0xff] }
  0xdd   : > { %413 = vst [vmem:[#allocation2 + $0x30] sm:$0xff] %v2359_v31  ;;  %545 = vmatmul.f32.gmra.mxu1 %v2364_v33 }
  0xe0   : > { %v312_v34 = vpop.f32.mrf.mxu0 }
  0xe1   : > { %v313_v36 = vadd.f32 %v2270_v48, %v312_v34 }
  0xe3   : > { %v2370_v37 = vmax.f32 %v313_v36, 0.0  ;;  %359 = vmatmul.f32.gmra.mxu0 %v248_v35 }
  0xe4   : > { %v2372_v38 = vld [vmem:[#allocation2 + $0x29] sm:$0xff] }
  0xe5   : > { %414 = vst [vmem:[#allocation2 + $0x38] sm:$0xff] %v2370_v37  ;;  %548 = vmatmul.f32.gmra.mxu1 %v2372_v38 }
  0xe8   : > { %v315_v39 = vpop.f32.mrf.mxu0 }
  0xe9   : > { %v316_v41 = vadd.f32 %v2270_v48, %v315_v39 }
  0xeb   : > { %v2378_v42 = vmax.f32 %v316_v41, 0.0  ;;  %362 = vmatmul.f32.gmra.mxu0 %v249_v40  ;;  %v1941_v40 = vld [vmem:[%s3438_s3 + $0x170] sm:$0xff]  ;;  %v1970_v41 = vld [vmem:[%s3438_s3 + $0x258] sm:$0xff] }
  0xec   : > { %v2380_v43 = vld [vmem:[#allocation2 + $0x31] sm:$0xff]  ;;  %737 = vmatpush.msrb.mxu3 %v1941_v40  ;;  %1048 = vmatpush.msrb.mxu2 %v1970_v41  ;;  %v2638_v40 = vld [vmem:[%s3438_s3 + $0x328] sm:$0xff] }
  0xed   : > { %415 = vst [vmem:[#allocation2 + $0x40] sm:$0xff] %v2378_v42  ;;  %551 = vmatmul.f32.gmra.mxu1 %v2380_v43 }
  0xee   : > { %738 = vmatpush.msrb.mxu3 %v1940_v51  ;;  %3460 = vst [vmem:[#allocation4_spill] sm:$0xff] %v2638_v40  ;;  %v1965_v51 = vld [vmem:[%s3438_s3 + $0x230] sm:$0xff] }
  0xf0   : > { %v318_v46 = vpop.f32.mrf.mxu0 }
  0xf1   : > { %v319_v49 = vadd.f32 %v2270_v48, %v318_v46 }
  0xf3   : > { %v2395_v53 = vmax.f32 %v319_v49, 0.0  ;;  %365 = vmatmul.f32.gmra.mxu0 %v250_v47  ;;  %v1939_v47 = vld [vmem:[%s3438_s3 + $0x160] sm:$0xff]  ;;  %v1969_v49 = vld [vmem:[%s3438_s3 + $0x250] sm:$0xff] }
  0xf4   : > { %v2400_v57 = vld [vmem:[#allocation2 + $0x39] sm:$0xff]  ;;  %739 = vmatpush.msrb.mxu3 %v1939_v47  ;;  %1049 = vmatpush.msrb.mxu2 %v1969_v49  ;;  %v1932_v47 = vld [vmem:[%s3438_s3 + $0x128] sm:$0xff] }
  0xf5   : > { %416 = vst [vmem:[#allocation2 + $0x48] sm:$0xff] %v2395_v53  ;;  %554 = vmatmul.f32.gmra.mxu1 %v2400_v57  ;;  %v1964_v49 = vld [vmem:[%s3438_s3 + $0x228] sm:$0xff] }
  0xf6   : > { %740 = vmatpush.msrb.mxu3 %v1938_v59 }
  0xf8   : > { %v321_v61 = vpop.f32.mrf.mxu0 }
  0xf9   : > { %v322_v63 = vadd.f32 %v2270_v48, %v321_v61  ;;  %v1968_v61 = vld [vmem:[%s3438_s3 + $0x248] sm:$0xff] }
  0xfa   : > { %1050 = vmatpush.msrb.mxu2 %v1968_v61  ;;  %v2675_v61 = vld [vmem:[%s3438_s3 + $0x310] sm:$0xff] }
  0xfb   : > { %v2415_v1 = vmax.f32 %v322_v63, 0.0  ;;  %368 = vmatmul.f32.gmra.mxu0 %v251_v62  ;;  %v1937_v62 = vld [vmem:[%s3438_s3 + $0x150] sm:$0xff]  ;;  %3463 = vst [vmem:[#allocation7_spill] sm:$0xff] %v2675_v61 }
  0xfc   : > { %v2420_v3 = vld [vmem:[#allocation2 + $0x41] sm:$0xff]  ;;  %v2543_v63 = vld [vmem:[%s3438_s3 + $0x370] sm:$0xff]  ;;  %741 = vmatpush.msrb.mxu3 %v1937_v62 }
  0xfd   : > { %417 = vst [vmem:[#allocation2 + $0x50] sm:$0xff] %v2415_v1  ;;  %557 = vmatmul.f32.gmra.mxu1 %v2420_v3  ;;  %652 = vmatmul.f32.vlgmr.msra.gmra.mxu2 %v2415_v1 }
  0xfe   : > { %1353 = vmatpush.msra.mxu0 %v2543_v63 }
 0x100   : > { %v324_v8 = vpop.f32.mrf.mxu0  ;;  %1354 = vmatpush.msra.mxu0 %v2551_v5 }
 0x101   : > { %v325_v10 = vadd.f32 %v2270_v48, %v324_v8 }
 0x102   : > { %1355 = vmatpush.msra.mxu0 %v2559_v7 }
 0x103   : > { %v2439_v12 = vmax.f32 %v325_v10, 0.0  ;;  %371 = vmatmul.f32.gmra.mxu0 %v252_v9  ;;  %v1967_v9 = vld [vmem:[%s3438_s3 + $0x240] sm:$0xff]  ;;  %v1936_v10 = vld [vmem:[%s3438_s3 + $0x148] sm:$0xff] }
 0x104   : > { %v2444_v16 = vld [vmem:[#allocation2 + $0x49] sm:$0xff]  ;;  %1051 = vmatpush.msrb.mxu2 %v1967_v9  ;;  %742 = vmatpush.msrb.mxu3 %v1936_v10  ;;  %v1963_v10 = vld [vmem:[%s3438_s3 + $0x220] sm:$0xff] }
 0x105   : > { %418 = vst [vmem:[#allocation2 + $0x58] sm:$0xff] %v2439_v12  ;;  %560 = vmatmul.f32.gmra.mxu1 %v2444_v16  ;;  %655 = vmatmul.f32.gmra.mxu2 %v2439_v12 }
 0x106   : > { %1356 = vmatpush.msra.mxu0 %v2576_v11 }
 0x108   : > { %v327_v21 = vpop.f32.mrf.mxu0 }
 0x109   : > { %v328_v25 = vadd.f32 %v2270_v48, %v327_v21  ;;  %v2602_v21 = vld [vmem:[%s3438_s3 + $0x340] sm:$0xff] }
 0x10b   : > { %v2466_v27 = vmax.f32 %v328_v25, 0.0  ;;  %374 = vmatmul.f32.gmra.mxu0 %v253_v23  ;;  %v1935_v23 = vld [vmem:[%s3438_s3 + $0x140] sm:$0xff]  ;;  %v1966_v25 = vld [vmem:[%s3438_s3 + $0x238] sm:$0xff] }
 0x10c   : > { %v2471_v29 = vld [vmem:[#allocation2 + $0x51] sm:$0xff]  ;;  %743 = vmatpush.msrb.mxu3 %v1935_v23  ;;  %1052 = vmatpush.msrb.mxu2 %v1966_v25 }
 0x10d   : > { %419 = vst [vmem:[#allocation2 + $0x60] sm:$0xff] %v2466_v27  ;;  %563 = vmatmul.f32.gmra.mxu1 %v2471_v29  ;;  %658 = vmatmul.f32.gmra.mxu2 %v2466_v27  ;;  %v1962_v23 = vld [vmem:[%s3438_s3 + $0x218] sm:$0xff] }
 0x10e   : > { %744 = vmatpush.msrb.mxu3 %v1934_v26  ;;  %1053 = vmatpush.msrb.mxu2 %v1965_v51  ;;  %v1961_v26 = vld [vmem:[%s3438_s3 + $0x210] sm:$0xff] }
 0x110   : > { %v330_v34 = vpop.f32.mrf.mxu0  ;;  %1054 = vmatpush.msrb.mxu2 %v1964_v49  ;;  %v1930_v49 = vld [vmem:[%s3438_s3 + $0x118] sm:$0xff] }
 0x111   : > { %v331_v35 = vadd.f32 %v2270_v48, %v330_v34 }
 0x112   : > { %1055 = vmatpush.msrb.mxu2 %v1963_v10 }
 0x113   : > { %v2483_v36 = vmax.f32 %v331_v35, 0.0  ;;  %622 = vmatmul.f32.vlgmr.msrb.gmra.mxu0 %v378_v52 }
 0x114   : > { %v2487_v39 = vld [vmem:[#allocation2 + $0x59] sm:$0xff]  ;;  %1056 = vmatpush.msrb.mxu2 %v1962_v23 }
 0x115   : > { %420 = vst [vmem:[#allocation2 + $0x68] sm:$0xff] %v2483_v36  ;;  %566 = vmatmul.f32.gmra.mxu1 %v2487_v39  ;;  %661 = vmatmul.f32.gmra.mxu2 %v2483_v36 }
 0x116   : > { %1057 = vmatpush.msrb.mxu2 %v1961_v26 }
 0x118   : > { %v333_v52 = vpop.f32.mrf.mxu0 }
 0x119   : > { %v334_v44 = vadd.f32 %v2270_v48, %v333_v52  ;;  %v1933_v52 = vld [vmem:[%s3438_s3 + $0x130] sm:$0xff] }
 0x11a   : > { %745 = vmatpush.msrb.mxu3 %v1933_v52 }
 0x11b   : > { %v2502_v45 = vmax.f32 %v334_v44, 0.0  ;;  %625 = vmatmul.f32.gmra.mxu0 %v379_v56  ;;  %v2655_v44 = vld [vmem:[%s3438_s3 + $0x320] sm:$0xff] }
 0x11c   : > { %v2506_v46 = vld [vmem:[#allocation2 + $0x61] sm:$0xff]  ;;  %3461 = vst [vmem:[#allocation5_spill] sm:$0xff] %v2655_v44  ;;  %746 = vmatpush.msrb.mxu3 %v1932_v47 }
 0x11d   : > { %421 = vst [vmem:[#allocation2 + $0x70] sm:$0xff] %v2502_v45  ;;  %569 = vmatmul.f32.gmra.mxu1 %v2506_v46  ;;  %664 = vmatmul.f32.gmra.mxu2 %v2502_v45  ;;  %v1960_v47 = vld [vmem:[%s3438_s3 + $0x208] sm:$0xff] }
 0x11e   : > { %1058 = vmatpush.msrb.mxu2 %v1960_v47 }
 0x120   : > { %v336_v55 = vpop.f32.mrf.mxu0 }
 0x121   : > { %v337_v56 = vadd.f32 %v2270_v48, %v336_v55  ;;  %v2668_v55 = vld [vmem:[%s3438_s3 + $0x318] sm:$0xff] }
 0x122   : > { %3462 = vst [vmem:[#allocation6_spill] sm:$0xff] %v2668_v55 }
 0x123   : > { %v2518_v50 = vmax.f32 %v337_v56, 0.0  ;;  %628 = vmatmul.f32.gmra.mxu0 %v2288_v60 }
 0x124   : > { %v2521_v54 = vld [vmem:[#allocation2 + $0x69] sm:$0xff] }
 0x125   : > { %422 = vst [vmem:[#allocation2 + $0x78] sm:$0xff] %v2518_v50  ;;  %572 = vmatmul.f32.gmra.mxu1 %v2521_v54  ;;  %667 = vmatmul.f32.gmra.mxu2 %v2518_v50 }
 0x128   : > { %v339_v0 = vpop.f32.mrf.mxu0 }
 0x129   : > { %v340_v2 = vadd.f32 %v2270_v48, %v339_v0 }
 0x12b   : > { %v2553_v6 = vmax.f32 %v340_v2, 0.0  ;;  %631 = vmatmul.f32.gmra.mxu0 %v2302_v4  ;;  %v2686_v2 = vld [vmem:[%s3438_s3 + $0x308] sm:$0xff] }
 0x12c   : > { %v2561_v8 = vld [vmem:[#allocation2 + $0x71] sm:$0xff]  ;;  %3464 = vst [vmem:[#allocation8_spill] sm:$0xff] %v2686_v2 }
 0x12d   : > { %423 = vst [vmem:[#allocation2 + $0x80] sm:$0xff] %v2553_v6  ;;  %575 = vmatmul.f32.vlgmr.msra.gmra.mxu3 %v2561_v8  ;;  %906 = vmatmul.f32.vlgmr.msrb.gmra.mxu1 %v2288_v60  ;;  %v2583_v60 = vld [vmem:[%s3438_s3 + $0x350] sm:$0xff] }
 0x12e   : > { %670 = vmatmul.f32.gmra.mxu2 %v2553_v6  ;;  %1357 = vmatpush.msra.mxu0 %v2583_v60 }
 0x130   : > { %v342_v14 = vpop.f32.mrf.mxu0  ;;  %1358 = vmatpush.msra.mxu0 %v2590_v18 }
 0x131   : > { %v343_v17 = vadd.f32 %v2270_v48, %v342_v14  ;;  %v2700_v14 = vld [vmem:[%s3438_s3 + $0x300] sm:$0xff] }
 0x132   : > { %1359 = vmatpush.msra.mxu0 %v2602_v21  ;;  %3465 = vst [vmem:[#allocation9_spill] sm:$0xff] %v2700_v14 }
 0x133   : > { %v2593_v19 = vmax.f32 %v343_v17, 0.0  ;;  %634 = vmatmul.f32.gmra.mxu0 %v2319_v13  ;;  %v1931_v17 = vld [vmem:[%s3438_s3 + $0x120] sm:$0xff] }
 0x134   : > { %v2596_v20 = vld [vmem:[#allocation2 + $0x79] sm:$0xff]  ;;  %1360 = vmatpush.msra.mxu0 %v2620_v28  ;;  %747 = vmatpush.msrb.mxu3 %v1931_v17 }
 0x135   : > { %424 = vst [vmem:[#allocation2 + $0x88] sm:$0xff] %v2593_v19  ;;  %578 = vmatmul.f32.gmra.mxu3 %v2596_v20  ;;  %909 = vmatmul.f32.gmra.mxu1 %v2302_v4 }
 0x136   : > { %673 = vmatmul.f32.gmra.mxu2 %v2593_v19  ;;  %1361 = vmatpush.msra.mxu0 %v2628_v32 }
 0x137   : > { %748 = vmatpush.msrb.mxu3 %v1930_v49 }
 0x138   : > { %v345_v4 = vpop.f32.mrf.mxu0  ;;  %1362 = vmatpush.msra.mxu0 %v2638_v40 }
 0x139   : > { %v346_v30 = vadd.f32 %v2270_v48, %v345_v4 }
 0x13a   : > { %v2630_v34 = vpop.f32.mrf.mxu1  ;;  %1363 = vmatpush.msra.mxu0 %v2655_v44 }
 0x13b   : > { %v2632_v35 = vmax.f32 %v346_v30, 0.0  ;;  %637 = vmatmul.f32.gmra.mxu0 %v2339_v22 }
 0x13c   : > { %v2640_v41 = vld [vmem:[#allocation2 + $0x81] sm:$0xff]  ;;  %1364 = vmatpush.msra.mxu0 %v2668_v55 }
 0x13d   : > { %425 = vst [vmem:[#allocation2 + $0x90] sm:$0xff] %v2632_v35  ;;  %581 = vmatmul.f32.gmra.mxu3 %v2640_v41  ;;  %912 = vmatmul.f32.gmra.mxu1 %v2319_v13 }
 0x13e   : > { %676 = vmatmul.f32.gmra.mxu2 %v2632_v35  ;;  %1365 = vmatpush.msra.mxu0 %v2675_v61 }
 0x140   : > { %v348_v56 = vpop.f32.mrf.mxu0  ;;  %1366 = vmatpush.msra.mxu0 %v2686_v2 }
 0x141   : > { %v349_v59 = vadd.f32 %v2270_v48, %v348_v56  ;;  %v1929_v56 = vld [vmem:[%s3438_s3 + $0x110] sm:$0xff] }
 0x142   : > { %v2677_v62 = vpop.f32.mrf.mxu1  ;;  %1367 = vmatpush.msra.mxu0 %v2700_v14  ;;  %749 = vmatpush.msrb.mxu3 %v1929_v56 }
 0x143   : > { %v2680_v0 = vmax.f32 %v349_v59, 0.0  ;;  %640 = vmatmul.f32.gmra.mxu0 %v2359_v31  ;;  %v1959_v59 = vld [vmem:[%s3438_s3 + $0x200] sm:$0xff] }
 0x144   : > { %v2688_v9 = vld [vmem:[#allocation2 + $0x89] sm:$0xff]  ;;  %1059 = vmatpush.msrb.mxu2 %v1959_v59 }
 0x145   : > { %426 = vst [vmem:[#allocation2 + $0x98] sm:$0xff] %v2680_v0  ;;  %584 = vmatmul.f32.gmra.mxu3 %v2688_v9  ;;  %915 = vmatmul.f32.gmra.mxu1 %v2339_v22 }
 0x146   : > { %679 = vmatmul.f32.gmra.mxu2 %v2680_v0 }
 0x148   : > { %v351_v25 = vpop.f32.mrf.mxu0 }
 0x149   : > { %v352_v4 = vadd.f32 %v2270_v48, %v351_v25 }
 0x14a   : > { %v2715_v30 = vpop.f32.mrf.mxu1 }
 0x14b   : > { %v2717_v51 = vmax.f32 %v352_v4, 0.0  ;;  %643 = vmatmul.f32.gmra.mxu0 %v2370_v37  ;;  %v1928_v4 = vld [vmem:[%s3438_s3 + $0x108] sm:$0xff] }
 0x14c   : > { %v2720_v52 = vld [vmem:[#allocation2 + $0x91] sm:$0xff]  ;;  %750 = vmatpush.msrb.mxu3 %v1928_v4 }
 0x14d   : > { %427 = vst [vmem:[#allocation2 + $0xa0] sm:$0xff] %v2717_v51  ;;  %587 = vmatmul.f32.gmra.mxu3 %v2720_v52  ;;  %918 = vmatmul.f32.gmra.mxu1 %v2359_v31  ;;  %v1990_v4 = vld [vmem:[%s3438_s3 + $0x2f8] sm:$0xff] }
 0x14e   : > { %682 = vmatmul.f32.gmra.mxu2 %v2717_v51 }
 0x150   : > { %v354_v10 = vpop.f32.mrf.mxu0 }
 0x151   : > { %v355_v17 = vadd.f32 %v2270_v48, %v354_v10 }
 0x152   : > { %v2739_v23 = vpop.f32.mrf.mxu1 }
 0x153   : > { %v2741_v25 = vmax.f32 %v355_v17, 0.0  ;;  %646 = vmatmul.f32.gmra.mxu0 %v2378_v42  ;;  %v1927_v17 = vld [vmem:[%s3438_s3 + $0x100] sm:$0xff] }
 0x154   : > { %v2744_v26 = vld [vmem:[#allocation2 + $0x99] sm:$0xff]  ;;  %751 = vmatpush.msrb.mxu3 %v1927_v17 }
 0x155   : > { %428 = vst [vmem:[#allocation2 + $0xa8] sm:$0xff] %v2741_v25  ;;  %590 = vmatmul.f32.gmra.mxu3 %v2744_v26  ;;  %921 = vmatmul.f32.gmra.mxu1 %v2370_v37 }
 0x156   : > { %685 = vmatmul.f32.gmra.mxu2 %v2741_v25  ;;  %1198 = vmatpush.msra.mxu3 %v1990_v4 }
 0x158   : > { %v357_v47 = vpop.f32.mrf.mxu0 }
 0x159   : > { %v358_v49 = vadd.f32 %v2270_v48, %v357_v47 }
 0x15a   : > { %v2754_v56 = vpop.f32.mrf.mxu1 }
 0x15b   : > { %v2756_v59 = vmax.f32 %v358_v49, 0.0  ;;  %649 = vmatmul.f32.gmra.mxu0 %v2395_v53 }
 0x15c   : > { %v2759_v10 = vld [vmem:[#allocation2 + $0xa1] sm:$0xff] }
 0x15d   : > { %429 = vst [vmem:[#allocation2 + $0xb0] sm:$0xff] %v2756_v59  ;;  %593 = vmatmul.f32.gmra.mxu3 %v2759_v10  ;;  %924 = vmatmul.f32.gmra.mxu1 %v2378_v42 }
 0x15e   : > { %688 = vmatmul.f32.gmra.mxu2 %v2756_v59 }
 0x160   : > { %v360_v47 = vpop.f32.mrf.mxu0 }
 0x161   : > { %v361_v49 = vadd.f32 %v2270_v48, %v360_v47 }
 0x162   : > { %v2772_v14 = vpop.f32.mrf.mxu1 }
 0x163   : > { %v2774_v2 = vmax.f32 %v361_v49, 0.0  ;;  %1368 = vmatmul.f32.vlgmr.msra.gmra.mxu0 %v2319_v13  ;;  %v1989_v49 = vld [vmem:[%s3438_s3 + $0x2f0] sm:$0xff] }
 0x164   : > { %v2777_v61 = vld [vmem:[#allocation2 + $0xa9] sm:$0xff]  ;;  %1199 = vmatpush.msra.mxu3 %v1989_v49 }
 0x165   : > { %430 = vst [vmem:[#allocation2 + $0xb8] sm:$0xff] %v2774_v2  ;;  %596 = vmatmul.f32.gmra.mxu3 %v2777_v61  ;;  %927 = vmatmul.f32.gmra.mxu1 %v2395_v53  ;;  %v2037_v49 = vld [vmem:[%s3438_s3 + $0x470] sm:$0xff] }
 0x166   : > { %691 = vmatmul.f32.gmra.mxu2 %v2774_v2 }
 0x168   : > { %v363_v17 = vpop.f32.mrf.mxu0 }
 0x169   : > { %v364_v4 = vadd.f32 %v2270_v48, %v363_v17  ;;  %v2038_v17 = vld [vmem:[%s3438_s3 + $0x478] sm:$0xff] }
 0x16a   : > { %v2784_v47 = vpop.f32.mrf.mxu1  ;;  %1660 = vmatpush.msra.mxu2 %v2038_v17  ;;  %v2021_v17 = vld [vmem:[%s3438_s3 + $0x3f0] sm:$0xff] }
 0x16b   : > { %3466 = vst [vmem:[#allocation10_spill] sm:$0xff] %v2784_v47  ;;  %v2786_v55 = vmax.f32 %v364_v4, 0.0  ;;  %1371 = vmatmul.f32.gmra.mxu0 %v2339_v22  ;;  %v2022_v22 = vld [vmem:[%s3438_s3 + $0x3f8] sm:$0xff] }
 0x16c   : > { %v2789_v13 = vld [vmem:[#allocation2 + $0xb1] sm:$0xff]  ;;  %1506 = vmatpush.msra.mxu1 %v2022_v22  ;;  %1661 = vmatpush.msra.mxu2 %v2037_v49 }
 0x16d   : > { %431 = vst [vmem:[#allocation2 + $0xc0] sm:$0xff] %v2786_v55  ;;  %599 = vmatmul.f32.gmra.mxu3 %v2789_v13  ;;  %930 = vmatmul.f32.gmra.mxu1 %v2415_v1 }
 0x16e   : > { %1060 = vmatmul.f32.vlgmr.msrb.gmra.mxu2 %v2324_v15  ;;  %v1988_v15 = vld [vmem:[%s3438_s3 + $0x2e8] sm:$0xff]  ;;  %1507 = vmatpush.msra.mxu1 %v2021_v17 }
 0x16f   : > { %1200 = vmatpush.msra.mxu3 %v1988_v15 }
 0x170   : > { %v366_v4 = vpop.f32.mrf.mxu0 }
 0x171   : > { %v367_v47 = vadd.f32 %v2270_v48, %v366_v4 }
 0x172   : > { %v2805_v44 = vpop.f32.mrf.mxu1 }
 0x173   : > { %3467 = vst [vmem:[#allocation11_spill] sm:$0xff] %v2805_v44  ;;  %v2807_v40 = vmax.f32 %v367_v47, 0.0  ;;  %1374 = vmatmul.f32.gmra.mxu0 %v2359_v31  ;;  %v695_v44 = vld [vmem:[#allocation2 + $0x2] sm:$0xff] }
 0x174   : > { %v2810_v32 = vld [vmem:[#allocation2 + $0xb9] sm:$0xff] }
 0x175   : > { %432 = vst [vmem:[#allocation2 + $0xc8] sm:$0xff] %v2807_v40  ;;  %602 = vmatmul.f32.gmra.mxu3 %v2810_v32  ;;  %933 = vmatmul.f32.gmra.mxu1 %v2439_v12 }
 0x176   : > { %1063 = vmatmul.f32.gmra.mxu2 %v2344_v24 }
 0x178   : > { %v369_v31 = vpop.f32.mrf.mxu0 }
 0x179   : > { %v2823_v47 = vadd.f32 %v2270_v48, %v369_v31  ;;  %v1987_v31 = vld [vmem:[%s3438_s3 + $0x2e0] sm:$0xff] }
 0x17a   : > { %v2828_v22 = vpop.f32.mrf.mxu1  ;;  %1201 = vmatpush.msra.mxu3 %v1987_v31 }
 0x17b   : > { %v3448_v4 = vmax.f32 %v2823_v47, 0.0  ;;  %1377 = vmatmul.f32.gmra.mxu0 %v2370_v37  ;;  %v2036_v37 = vld [vmem:[%s3438_s3 + $0x468] sm:$0xff] }
 0x17c   : > { %1662 = vmatpush.msra.mxu2 %v2036_v37  ;;  %v2859_v37 = vld [vmem:[#allocation2 + $0x12] sm:$0xff] }
 0x17d   : > { %433 = vst [vmem:[#allocation2 + $0xd0] sm:$0xff] %v3448_v4  ;;  %752 = vmatmul.f32.vlgmr.msrb.gmra.mxu3 %v695_v44  ;;  %936 = vmatmul.f32.gmra.mxu1 %v2466_v27 }
 0x17e   : > { %1066 = vmatmul.f32.gmra.mxu2 %v2364_v33  ;;  %v696_v33 = vld [vmem:[#allocation2 + $0xa] sm:$0xff] }
 0x180   : > { %v372_v24 = vpop.f32.mrf.mxu0  ;;  %v2836_v15 = vpop.f32.mrf.mxu2 }
 0x181   : > { %3468 = vst [vmem:[#allocation12_spill] sm:$0xff] %v2836_v15  ;;  %v373_v49 = vadd.f32 %v2270_v48, %v372_v24  ;;  %v2020_v24 = vld [vmem:[%s3438_s3 + $0x3e8] sm:$0xff] }
 0x182   : > { %v2845_v17 = vpop.f32.mrf.mxu1  ;;  %1508 = vmatpush.msra.mxu1 %v2020_v24  ;;  %v1985_v24 = vld [vmem:[%s3438_s3 + $0x2d0] sm:$0xff] }
 0x183   : > { %v405_v44 = vmax.f32 %v373_v49, 0.0  ;;  %1380 = vmatmul.f32.gmra.mxu0 %v2378_v42 }
 0x185   : > { %434 = vst [vmem:[#allocation2 + $0xd8] sm:$0xff] %v405_v44  ;;  %755 = vmatmul.f32.gmra.mxu3 %v696_v33  ;;  %939 = vmatmul.f32.gmra.mxu1 %v2483_v36  ;;  %v2878_v33 = vld [vmem:[#allocation2 + $0x1a] sm:$0xff] }
 0x186   : > { %1069 = vmatmul.f32.gmra.mxu2 %v2372_v38  ;;  %v1986_v38 = vld [vmem:[%s3438_s3 + $0x2d8] sm:$0xff] }
 0x187   : > { %1202 = vmatpush.msra.mxu3 %v1986_v38 }
 0x188   : > { %v375_v4 = vpop.f32.mrf.mxu0  ;;  %v2853_v15 = vpop.f32.mrf.mxu2 }
 0x189   : > { %v376_v31 = vadd.f32 %v2270_v48, %v375_v4  ;;  %v2035_v48 = vld [vmem:[%s3438_s3 + $0x460] sm:$0xff]  ;;  %1203 = vmatpush.msra.mxu3 %v1985_v24 }
 0x18a   : > { %v2856_v49 = vpop.f32.mrf.mxu1  ;;  %1663 = vmatpush.msra.mxu2 %v2035_v48  ;;  %v2019_v4 = vld [vmem:[%s3438_s3 + $0x3e0] sm:$0xff] }
 0x18b   : > { %v406_v42 = vmax.f32 %v376_v31, 0.0  ;;  %1383 = vmatmul.f32.gmra.mxu0 %v2395_v53  ;;  %1509 = vmatpush.msra.mxu1 %v2019_v4  ;;  %v2034_v31 = vld [vmem:[%s3438_s3 + $0x458] sm:$0xff]  ;;  %v2905_v4 = vld [vmem:[#allocation2 + $0x2a] sm:$0xff] }
 0x18c   : > { %1664 = vmatpush.msra.mxu2 %v2034_v31 }
 0x18d   : > { %435 = vst [vmem:[#allocation2 + $0xe0] sm:$0xff] %v406_v42  ;;  %758 = vmatmul.f32.gmra.mxu3 %v2859_v37  ;;  %942 = vmatmul.f32.gmra.mxu1 %v2502_v45 }
 0x18e   : > { %1072 = vmatmul.f32.gmra.mxu2 %v2380_v43 }
 0x190   : > { %v2870_v53 = vpop.f32.mrf.mxu2 }
 0x191   : > { %3469 = vst [vmem:[#allocation13_spill] sm:$0xff] %v2870_v53  ;;  %v2012_v53 = vld [vmem:[%s3438_s3 + $0x3a8] sm:$0xff] }
 0x192   : > { %v2875_v44 = vpop.f32.mrf.mxu1 }
 0x193   : > { %1386 = vmatmul.f32.gmra.mxu0 %v2415_v1  ;;  %v2894_v1 = vld [vmem:[#allocation2 + $0x22] sm:$0xff] }
 0x195   : > { %761 = vmatmul.f32.gmra.mxu3 %v2878_v33  ;;  %945 = vmatmul.f32.gmra.mxu1 %v2518_v50 }
 0x196   : > { %1075 = vmatmul.f32.gmra.mxu2 %v2400_v57  ;;  %v2018_v57 = vld [vmem:[%s3438_s3 + $0x3d8] sm:$0xff] }
 0x197   : > { %1510 = vmatpush.msra.mxu1 %v2018_v57  ;;  %v2922_v57 = vld [vmem:[#allocation2 + $0x32] sm:$0xff] }
 0x198   : > { %v2883_v43 = vpop.f32.mrf.mxu2 }
 0x199   : > { %3470 = vst [vmem:[#allocation14_spill] sm:$0xff] %v2883_v43  ;;  %v1983_v43 = vld [vmem:[%s3438_s3 + $0x2c0] sm:$0xff] }
 0x19a   : > { %v2891_v42 = vpop.f32.mrf.mxu1 }
 0x19b   : > { %3471 = vst [vmem:[#allocation15_spill] sm:$0xff] %v2891_v42  ;;  %1389 = vmatmul.f32.gmra.mxu0 %v2439_v12  ;;  %v1984_v12 = vld [vmem:[%s3438_s3 + $0x2c8] sm:$0xff]  ;;  %v2976_v42 = vpop.f32.mrf.mxu0 }
 0x19c   : > { %1204 = vmatpush.msra.mxu3 %v1984_v12 }
 0x19d   : > { %764 = vmatmul.f32.gmra.mxu3 %v2894_v1  ;;  %948 = vmatmul.f32.gmra.mxu1 %v2553_v6 }
 0x19e   : > { %1078 = vmatmul.f32.gmra.mxu2 %v2420_v3  ;;  %v2033_v3 = vld [vmem:[%s3438_s3 + $0x450] sm:$0xff]  ;;  %1205 = vmatpush.msra.mxu3 %v1983_v43 }
 0x19f   : > { %1665 = vmatpush.msra.mxu2 %v2033_v3 }
 0x1a0   : > { %v665_v38 = vpop.f32.mrf.mxu2 }
 0x1a2   : > { %v2902_v48 = vpop.f32.mrf.mxu1 }
 0x1a3   : > { %3472 = vst [vmem:[#allocation16_spill] sm:$0xff] %v2902_v48  ;;  %1392 = vmatmul.f32.gmra.mxu0 %v2466_v27  ;;  %v2017_v27 = vld [vmem:[%s3438_s3 + $0x3d0] sm:$0xff]  ;;  %v2938_v48 = vld [vmem:[#allocation2 + $0x3a] sm:$0xff] }
 0x1a4   : > { %1511 = vmatpush.msra.mxu1 %v2017_v27 }
 0x1a5   : > { %767 = vmatmul.f32.gmra.mxu3 %v2905_v4  ;;  %951 = vmatmul.f32.gmra.mxu1 %v2593_v19 }
 0x1a6   : > { %1081 = vmatmul.f32.gmra.mxu2 %v2444_v16 }
 0x1a8   : > { %v668_v24 = vpop.f32.mrf.mxu2 }
 0x1aa   : > { %v2919_v31 = vpop.f32.mrf.mxu1 }
 0x1ab   : > { %1395 = vmatmul.f32.gmra.mxu0 %v2483_v36  ;;  %v2032_v36 = vld [vmem:[%s3438_s3 + $0x448] sm:$0xff] }
 0x1ac   : > { %1666 = vmatpush.msra.mxu2 %v2032_v36 }
 0x1ad   : > { %770 = vmatmul.f32.gmra.mxu3 %v2922_v57  ;;  %954 = vmatmul.f32.gmra.mxu1 %v2632_v35 }
 0x1ae   : > { %1084 = vmatmul.f32.gmra.mxu2 %v2471_v29  ;;  %v2016_v29 = vld [vmem:[%s3438_s3 + $0x3c8] sm:$0xff] }
 0x1af   : > { %1512 = vmatpush.msra.mxu1 %v2016_v29 }
 0x1b0   : > { %v576_v16 = vpop.f32.mrf.mxu3 }
 0x1b1   : > { %v2927_v12 = vadd.f32 %v665_v38, %v576_v16  ;;  %v671_v3 = vpop.f32.mrf.mxu2 }
 0x1b2   : > { %v2935_v27 = vpop.f32.mrf.mxu1 }
 0x1b3   : > { %3473 = vst [vmem:[#allocation17_spill] sm:$0xff] %v2927_v12  ;;  %1398 = vmatmul.f32.gmra.mxu0 %v2502_v45  ;;  %v2015_v45 = vld [vmem:[%s3438_s3 + $0x3c0] sm:$0xff] }
 0x1b4   : > { %v2954_v12 = vld [vmem:[#allocation2 + $0x42] sm:$0xff]  ;;  %1513 = vmatpush.msra.mxu1 %v2015_v45 }
 0x1b5   : > { %773 = vmatmul.f32.gmra.mxu3 %v2938_v48  ;;  %957 = vmatmul.f32.gmra.mxu1 %v2680_v0 }
 0x1b6   : > { %1087 = vmatmul.f32.gmra.mxu2 %v2487_v39  ;;  %v1982_v39 = vld [vmem:[%s3438_s3 + $0x2b8] sm:$0xff] }
 0x1b7   : > { %1206 = vmatpush.msra.mxu3 %v1982_v39  ;;  %v2982_v39 = vld [vmem:[#allocation2 + $0x4a] sm:$0xff] }
 0x1b8   : > { %v579_v38 = vpop.f32.mrf.mxu3 }
 0x1b9   : > { %v2946_v16 = vadd.f32 %v668_v24, %v579_v38  ;;  %v674_v43 = vpop.f32.mrf.mxu2  ;;  %v2014_v24 = vld [vmem:[%s3438_s3 + $0x3b8] sm:$0xff]  ;;  %v2013_v38 = vld [vmem:[%s3438_s3 + $0x3b0] sm:$0xff] }
 0x1ba   : > { %v2952_v36 = vpop.f32.mrf.mxu1  ;;  %1514 = vmatpush.msra.mxu1 %v2014_v24 }
 0x1bb   : > { %3474 = vst [vmem:[#allocation18_spill] sm:$0xff] %v2946_v16  ;;  %1401 = vmatmul.f32.gmra.mxu0 %v2518_v50  ;;  %v2031_v50 = vld [vmem:[%s3438_s3 + $0x440] sm:$0xff] }
 0x1bc   : > { %1667 = vmatpush.msra.mxu2 %v2031_v50  ;;  %1515 = vmatpush.msra.mxu1 %v2013_v38  ;;  %v1981_v38 = vld [vmem:[%s3438_s3 + $0x2b0] sm:$0xff] }
 0x1bd   : > { %776 = vmatmul.f32.gmra.mxu3 %v2954_v12  ;;  %960 = vmatmul.f32.gmra.mxu1 %v2717_v51 }
 0x1be   : > { %1090 = vmatmul.f32.gmra.mxu2 %v2506_v46  ;;  %1516 = vmatpush.msra.mxu1 %v2012_v53  ;;  %v2011_v46 = vld [vmem:[%s3438_s3 + $0x3a0] sm:$0xff]  ;;  %v2009_v53 = vld [vmem:[%s3438_s3 + $0x390] sm:$0xff] }
 0x1bf   : > { %1207 = vmatpush.msra.mxu3 %v1981_v38  ;;  %v3022_v38 = vld [vmem:[#allocation2 + $0x5a] sm:$0xff] }
 0x1c0   : > { %v582_v29 = vpop.f32.mrf.mxu3  ;;  %1517 = vmatpush.msra.mxu1 %v2011_v46  ;;  %v3010_v46 = vld [vmem:[#allocation2 + $0x52] sm:$0xff]  ;;  %3478 = vst [vmem:[#allocation22_spill] sm:$0xff] %v3022_v38 }
 0x1c1   : > { %v2971_v45 = vadd.f32 %v671_v3, %v582_v29  ;;  %v677_v16 = vpop.f32.mrf.mxu2  ;;  %v2010_v3 = vld [vmem:[%s3438_s3 + $0x398] sm:$0xff] }
 0x1c2   : > { %v2989_v50 = vpop.f32.mrf.mxu1  ;;  %1518 = vmatpush.msra.mxu1 %v2010_v3  ;;  %v3012_v3 = vpop.f32.mrf.mxu0 }
 0x1c3   : > { %3475 = vst [vmem:[#allocation19_spill] sm:$0xff] %v2971_v45  ;;  %1404 = vmatmul.f32.gmra.mxu0 %v2553_v6  ;;  %v2030_v45 = vld [vmem:[%s3438_s3 + $0x438] sm:$0xff] }
 0x1c4   : > { %1519 = vmatpush.msra.mxu1 %v2009_v53  ;;  %1668 = vmatpush.msra.mxu2 %v2030_v45 }
 0x1c5   : > { %779 = vmatmul.f32.gmra.mxu3 %v2982_v39  ;;  %963 = vmatmul.f32.gmra.mxu1 %v2741_v25 }
 0x1c6   : > { %1093 = vmatmul.f32.gmra.mxu2 %v2521_v54  ;;  %v2008_v54 = vld [vmem:[%s3438_s3 + $0x388] sm:$0xff] }
 0x1c7   : > { %1520 = vmatpush.msra.mxu1 %v2008_v54  ;;  %v1980_v54 = vld [vmem:[%s3438_s3 + $0x2a8] sm:$0xff] }
 0x1c8   : > { %v585_v6 = vpop.f32.mrf.mxu3  ;;  %1208 = vmatpush.msra.mxu3 %v1980_v54 }
 0x1c9   : > { %v2995_v24 = vadd.f32 %v674_v43, %v585_v6  ;;  %v680_v29 = vpop.f32.mrf.mxu2  ;;  %v2007_v43 = vld [vmem:[%s3438_s3 + $0x380] sm:$0xff] }
 0x1ca   : > { %1521 = vmatpush.msra.mxu1 %v2007_v43  ;;  %v3017_v6 = vpop.f32.mrf.mxu1 }
 0x1cb   : > { %3476 = vst [vmem:[#allocation20_spill] sm:$0xff] %v2995_v24  ;;  %1407 = vmatmul.f32.gmra.mxu0 %v2593_v19  ;;  %v3040_v24 = vld [vmem:[#allocation2 + $0x62] sm:$0xff] }
 0x1cc   : > { %3480 = vst [vmem:[#allocation24_spill] sm:$0xff] %v3040_v24 }
 0x1cd   : > { %782 = vmatmul.f32.gmra.mxu3 %v3010_v46  ;;  %966 = vmatmul.f32.gmra.mxu1 %v2756_v59 }
 0x1ce   : > { %1096 = vmatmul.f32.gmra.mxu2 %v2561_v8  ;;  %v2029_v8 = vld [vmem:[%s3438_s3 + $0x430] sm:$0xff] }
 0x1cf   : > { %1669 = vmatpush.msra.mxu2 %v2029_v8 }
 0x1d0   : > { %v588_v19 = vpop.f32.mrf.mxu3 }
 0x1d1   : > { %v3019_v45 = vadd.f32 %v677_v16, %v588_v19  ;;  %v683_v53 = vpop.f32.mrf.mxu2  ;;  %v3033_v16 = vpop.f32.mrf.mxu0 }
 0x1d3   : > { %3477 = vst [vmem:[#allocation21_spill] sm:$0xff] %v3019_v45  ;;  %1410 = vmatmul.f32.gmra.mxu0 %v2632_v35  ;;  %v3037_v45 = vpop.f32.mrf.mxu1 }
 0x1d5   : > { %785 = vmatmul.f32.gmra.mxu3 %v3022_v38  ;;  %969 = vmatmul.f32.gmra.mxu1 %v2774_v2  ;;  %v1465_v38 = vld [vmem:[#allocation2 + $0x21] sm:$0xff] }
 0x1d6   : > { %1099 = vmatmul.f32.gmra.mxu2 %v2596_v20 }
 0x1d8   : > { %v591_v35 = vpop.f32.mrf.mxu3 }
 0x1d9   : > { %v3035_v43 = vadd.f32 %v680_v29, %v591_v35  ;;  %v686_v19 = vpop.f32.mrf.mxu2  ;;  %v3045_v54 = vpop.f32.mrf.mxu0  ;;  %v2028_v35 = vld [vmem:[%s3438_s3 + $0x428] sm:$0xff] }
 0x1da   : > { %1670 = vmatpush.msra.mxu2 %v2028_v35 }
 0x1db   : > { %3479 = vst [vmem:[#allocation23_spill] sm:$0xff] %v3035_v43  ;;  %1413 = vmatmul.f32.gmra.mxu0 %v2680_v0  ;;  %v1979_v0 = vld [vmem:[%s3438_s3 + $0x2a0] sm:$0xff]  ;;  %v3056_v43 = vpop.f32.mrf.mxu1 }
 0x1dc   : > { %1209 = vmatpush.msra.mxu3 %v1979_v0  ;;  %v1978_v0 = vld [vmem:[%s3438_s3 + $0x298] sm:$0xff] }
 0x1dd   : > { %788 = vmatmul.f32.gmra.mxu3 %v3040_v24  ;;  %972 = vmatmul.f32.gmra.mxu1 %v2786_v55  ;;  %v3058_v24 = vld [vmem:[#allocation2 + $0x6a] sm:$0xff] }
 0x1de   : > { %1102 = vmatmul.f32.gmra.mxu2 %v2640_v41  ;;  %3482 = vst [vmem:[#allocation26_spill] sm:$0xff] %v3058_v24  ;;  %1210 = vmatpush.msra.mxu3 %v1978_v0 }
 0x1e0   : > { %v594_v20 = vpop.f32.mrf.mxu3 }
 0x1e1   : > { %v3047_v8 = vadd.f32 %v683_v53, %v594_v20  ;;  %v689_v29 = vpop.f32.mrf.mxu2  ;;  %v3065_v20 = vpop.f32.mrf.mxu0 }
 0x1e3   : > { %3481 = vst [vmem:[#allocation25_spill] sm:$0xff] %v3047_v8  ;;  %1416 = vmatmul.f32.gmra.mxu0 %v2717_v51  ;;  %v3068_v8 = vld [vmem:[#allocation2 + $0x72] sm:$0xff] }
 0x1e4   : > { %3484 = vst [vmem:[#allocation28_spill] sm:$0xff] %v3068_v8 }
 0x1e5   : > { %791 = vmatmul.f32.gmra.mxu3 %v3058_v24  ;;  %975 = vmatmul.f32.gmra.mxu1 %v2807_v40 }
 0x1e6   : > { %1105 = vmatmul.f32.gmra.mxu2 %v2688_v9  ;;  %v2027_v9 = vld [vmem:[%s3438_s3 + $0x420] sm:$0xff] }
 0x1e7   : > { %1671 = vmatpush.msra.mxu2 %v2027_v9  ;;  %v2026_v9 = vld [vmem:[%s3438_s3 + $0x418] sm:$0xff] }
 0x1e8   : > { %v597_v41 = vpop.f32.mrf.mxu3 }
 0x1e9   : > { %v3063_v51 = vadd.f32 %v686_v19, %v597_v41  ;;  %v692_v53 = vpop.f32.mrf.mxu2  ;;  %v3077_v19 = vpop.f32.mrf.mxu1  ;;  %1672 = vmatpush.msra.mxu2 %v2026_v9  ;;  %v1468_v9 = vld [vmem:[#allocation2 + $0x39] sm:$0xff] }
 0x1eb   : > { %3483 = vst [vmem:[#allocation27_spill] sm:$0xff] %v3063_v51  ;;  %1419 = vmatmul.f32.gmra.mxu0 %v2741_v25  ;;  %v1466_v51 = vld [vmem:[#allocation2 + $0x29] sm:$0xff] }
 0x1ed   : > { %794 = vmatmul.f32.gmra.mxu3 %v3068_v8  ;;  %1522 = vmatmul.f32.vlgmr.msra.gmra.mxu1 %v1465_v38  ;;  %v3083_v38 = vld [vmem:[#allocation2 + $0x7a] sm:$0xff]  ;;  %v3085_v8 = vpop.f32.mrf.mxu0 }
 0x1ee   : > { %1108 = vmatmul.f32.gmra.mxu2 %v2720_v52  ;;  %3486 = vst [vmem:[#allocation30_spill] sm:$0xff] %v3083_v38 }
 0x1f0   : > { %v600_v25 = vpop.f32.mrf.mxu3 }
 0x1f1   : > { %v3080_v35 = vadd.f32 %v689_v29, %v600_v25  ;;  %v1061_v41 = vpop.f32.mrf.mxu2  ;;  %v3089_v24 = vpop.f32.mrf.mxu1  ;;  %v3100_v25 = vld [vmem:[#allocation2 + $0x82] sm:$0xff] }
 0x1f3   : > { %3485 = vst [vmem:[#allocation29_spill] sm:$0xff] %v3080_v35  ;;  %1422 = vmatmul.f32.gmra.mxu0 %v2756_v59  ;;  %v1977_v59 = vld [vmem:[%s3438_s3 + $0x290] sm:$0xff] }
 0x1f4   : > { %1211 = vmatpush.msra.mxu3 %v1977_v59  ;;  %v3112_v59 = vld [vmem:[#allocation2 + $0x8a] sm:$0xff] }
 0x1f5   : > { %797 = vmatmul.f32.gmra.mxu3 %v3083_v38  ;;  %1525 = vmatmul.f32.gmra.mxu1 %v1466_v51  ;;  %v1467_v51 = vld [vmem:[#allocation2 + $0x31] sm:$0xff] }
 0x1f6   : > { %1111 = vmatmul.f32.gmra.mxu2 %v2744_v26  ;;  %v3106_v26 = vpop.f32.mrf.mxu0 }
 0x1f8   : > { %v603_v52 = vpop.f32.mrf.mxu3 }
 0x1f9   : > { %v3091_v0 = vadd.f32 %v692_v53, %v603_v52  ;;  %v1064_v29 = vpop.f32.mrf.mxu2  ;;  %v3108_v35 = vpop.f32.mrf.mxu1 }
 0x1fb   : > { %3487 = vst [vmem:[#allocation31_spill] sm:$0xff] %v3091_v0  ;;  %1425 = vmatmul.f32.gmra.mxu0 %v2774_v2  ;;  %v624_v2 = vadd.f32 %v2976_v42, %v2630_v34  ;;  %v1976_v34 = vld [vmem:[%s3438_s3 + $0x288] sm:$0xff] }
 0x1fc   : > { %1212 = vmatpush.msra.mxu3 %v1976_v34 }
 0x1fd   : > { %800 = vmatmul.f32.gmra.mxu3 %v3100_v25  ;;  %1528 = vmatmul.f32.gmra.mxu1 %v1467_v51 }
 0x1fe   : > { %1114 = vmatmul.f32.gmra.mxu2 %v2759_v10  ;;  %v2025_v10 = vld [vmem:[%s3438_s3 + $0x410] sm:$0xff]  ;;  %v3126_v51 = vpop.f32.mrf.mxu0 }
 0x1ff   : > { %1673 = vmatpush.msra.mxu2 %v2025_v10 }
 0x200   : > { %v753_v53 = vpop.f32.mrf.mxu3 }
 0x201   : > { %v825_v52 = vadd.f32 %v753_v53, %v624_v2  ;;  %v1067_v0 = vpop.f32.mrf.mxu2 }
 0x203   : > { %v979_v38 = vadd.f32 %v2919_v31, %v825_v52  ;;  %1428 = vmatmul.f32.gmra.mxu0 %v2786_v55  ;;  %v627_v55 = vadd.f32 %v3012_v3, %v2677_v62  ;;  %v2024_v52 = vld [vmem:[%s3438_s3 + $0x408] sm:$0xff]  ;;  %v2023_v3 = vld [vmem:[%s3438_s3 + $0x400] sm:$0xff] }
 0x204   : > { %1674 = vmatpush.msra.mxu2 %v2024_v52  ;;  %v1469_v62 = vld [vmem:[#allocation2 + $0x41] sm:$0xff] }
 0x205   : > { %803 = vmatmul.f32.gmra.mxu3 %v3112_v59  ;;  %1531 = vmatmul.f32.gmra.mxu1 %v1468_v9  ;;  %v3121_v42 = vadd.f32 %v1061_v41, %v979_v38  ;;  %v3135_v41 = vld [vmem:[#allocation2 + $0x92] sm:$0xff]  ;;  %v3154_v52 = vld [vmem:[#allocation2 + $0x9a] sm:$0xff] }
 0x206   : > { %1117 = vmatmul.f32.gmra.mxu2 %v2777_v61  ;;  %v3133_v61 = vpop.f32.mrf.mxu1 }
 0x207   : > { %1675 = vmatpush.msra.mxu2 %v2023_v3 }
 0x208   : > { %v756_v31 = vpop.f32.mrf.mxu3 }
 0x209   : > { %v826_v2 = vadd.f32 %v756_v31, %v627_v55  ;;  %v1070_v53 = vpop.f32.mrf.mxu2  ;;  %v3146_v55 = vpop.f32.mrf.mxu0 }
 0x20b   : > { %v980_v9 = vadd.f32 %v2935_v27, %v826_v2  ;;  %1431 = vmatmul.f32.gmra.mxu0 %v2807_v40  ;;  %v630_v27 = vadd.f32 %v3033_v16, %v2715_v30  ;;  %v1975_v2 = vld [vmem:[%s3438_s3 + $0x280] sm:$0xff] }
 0x20c   : > { %1213 = vmatpush.msra.mxu3 %v1975_v2 }
 0x20d   : > { %806 = vmatmul.f32.gmra.mxu3 %v3135_v41  ;;  %1534 = vmatmul.f32.gmra.mxu1 %v1469_v62  ;;  %v3141_v38 = vadd.f32 %v1064_v29, %v980_v9  ;;  %v3488_v29 = vmax.f32 %v2823_v47, 0.0 }
 0x20e   : > { %1120 = vmatmul.f32.gmra.mxu2 %v2789_v13  ;;  %v1470_v13 = vld [vmem:[#allocation2 + $0x49] sm:$0xff]  ;;  %v3159_v16 = vpop.f32.mrf.mxu1  ;;  %2073 = vmatpush.msrb.mxu3 %v2526_v58  ;;  %v3172_v58 = vld [vmem:[#allocation2 + $0xc1] sm:$0xff] }
 0x210   : > { %v759_v40 = vpop.f32.mrf.mxu3  ;;  %2074 = vmatpush.msrb.mxu3 %v2543_v63  ;;  %v636_v63 = vadd.f32 %v3065_v20, %v2754_v56  ;;  %v3489_v56 = vld [vmem:[#allocation3_spill] sm:$0xff] }
 0x211   : > { %v827_v34 = vadd.f32 %v759_v40, %v630_v27  ;;  %v1073_v10 = vpop.f32.mrf.mxu2  ;;  %v1471_v27 = vld [vmem:[#allocation2 + $0x51] sm:$0xff] }
 0x212   : > { %2075 = vmatpush.msrb.mxu3 %v2551_v5  ;;  %v3187_v40 = vld [vmem:[#allocation2 + $0xaa] sm:$0xff] }
 0x213   : > { %v981_v31 = vadd.f32 %v2952_v36, %v827_v34  ;;  %1434 = vmatmul.f32.gmra.mxu0 %v3488_v29  ;;  %v633_v36 = vadd.f32 %v3045_v54, %v2739_v23  ;;  %v1472_v34 = vld [vmem:[#allocation2 + $0x59] sm:$0xff]  ;;  %v1473_v29 = vld [vmem:[#allocation2 + $0x61] sm:$0xff] }
 0x214   : > { %2076 = vmatpush.msrb.mxu3 %v2559_v7 }
 0x215   : > { %809 = vmatmul.f32.gmra.mxu3 %v3154_v52  ;;  %1537 = vmatmul.f32.gmra.mxu1 %v1470_v13  ;;  %v3157_v30 = vadd.f32 %v1067_v0, %v981_v31  ;;  %v3168_v0 = vld [vmem:[#allocation2 + $0xa2] sm:$0xff]  ;;  %v3491_v13 = vld [vmem:[#allocation5_spill] sm:$0xff] }
 0x216   : > { %1123 = vmatmul.f32.gmra.mxu2 %v2810_v32  ;;  %2077 = vmatpush.msrb.mxu3 %v2576_v11  ;;  %v3180_v5 = vpop.f32.mrf.mxu1 }
 0x218   : > { %v762_v47 = vpop.f32.mrf.mxu3  ;;  %2078 = vmatpush.msrb.mxu3 %v2583_v60  ;;  %v639_v60 = vadd.f32 %v3085_v8, %v2772_v14  ;;  %v3492_v14 = vld [vmem:[#allocation6_spill] sm:$0xff] }
 0x219   : > { %v828_v9 = vadd.f32 %v762_v47, %v633_v36  ;;  %v1076_v62 = vpop.f32.mrf.mxu2  ;;  %v3493_v8 = vld [vmem:[#allocation10_spill] sm:$0xff] }
 0x21a   : > { %2079 = vmatpush.msrb.mxu3 %v2590_v18  ;;  %v642_v36 = vadd.f32 %v3106_v26, %v3493_v8 }
 0x21b   : > { %v982_v3 = vadd.f32 %v2989_v50, %v828_v9  ;;  %v3494_v9 = vld [vmem:[#allocation7_spill] sm:$0xff] }
 0x21c   : > { %2080 = vmatpush.msrb.mxu3 %v2602_v21  ;;  %v3490_v21 = vld [vmem:[#allocation4_spill] sm:$0xff] }
 0x21d   : > { %812 = vmatmul.f32.gmra.mxu3 %v3168_v0  ;;  %1540 = vmatmul.f32.gmra.mxu1 %v1471_v27  ;;  %v3174_v32 = vadd.f32 %v1070_v53, %v982_v3  ;;  %v3185_v53 = vld [vmem:[#allocation2 + $0xc9] sm:$0xff] }
 0x21e   : > { %1126 = vmatmul.f32.gmra.mxu2 %v3172_v58  ;;  %2081 = vmatpush.msrb.mxu3 %v2620_v28  ;;  %v3198_v31 = vpop.f32.mrf.mxu1  ;;  %v3495_v27 = vld [vmem:[#allocation8_spill] sm:$0xff] }
 0x220   : > { %v765_v23 = vpop.f32.mrf.mxu3  ;;  %2082 = vmatpush.msrb.mxu3 %v3489_v56 }
 0x221   : > { %v829_v7 = vadd.f32 %v765_v23, %v636_v63  ;;  %v1079_v50 = vpop.f32.mrf.mxu2 }
 0x222   : > { %2083 = vmatpush.msrb.mxu3 %v3490_v21  ;;  %v1475_v21 = vld [vmem:[#allocation2 + $0x71] sm:$0xff] }
 0x223   : > { %v983_v54 = vadd.f32 %v3017_v6, %v829_v7  ;;  %v1474_v7 = vld [vmem:[#allocation2 + $0x69] sm:$0xff] }
 0x224   : > { %2084 = vmatpush.msrb.mxu3 %v3491_v13 }
 0x225   : > { %815 = vmatmul.f32.gmra.mxu3 %v3187_v40  ;;  %1543 = vmatmul.f32.gmra.mxu1 %v1472_v34  ;;  %v3191_v11 = vadd.f32 %v1073_v10, %v983_v54  ;;  %v3202_v10 = vld [vmem:[#allocation2 + $0xb2] sm:$0xff]  ;;  %v3497_v34 = vld [vmem:[#allocation11_spill] sm:$0xff] }
 0x226   : > { %1129 = vmatmul.f32.gmra.mxu2 %v3185_v53  ;;  %2085 = vmatpush.msrb.mxu3 %v3492_v14  ;;  %v3215_v23 = vpop.f32.mrf.mxu1  ;;  %v3496_v54 = vld [vmem:[#allocation9_spill] sm:$0xff] }
 0x228   : > { %v768_v18 = vpop.f32.mrf.mxu3  ;;  %2086 = vmatpush.msrb.mxu3 %v3494_v9 }
 0x229   : > { %v830_v6 = vadd.f32 %v768_v18, %v639_v60  ;;  %v1082_v20 = vpop.f32.mrf.mxu2  ;;  %v645_v60 = vadd.f32 %v3126_v51, %v3497_v34 }
 0x22a   : > { %2087 = vmatpush.msrb.mxu3 %v3495_v27  ;;  %v1477_v27 = vld [vmem:[#allocation2 + $0x81] sm:$0xff] }
 0x22b   : > { %v984_v2 = vadd.f32 %v3037_v45, %v830_v6 }
 0x22c   : > { %2088 = vmatpush.msrb.mxu3 %v3496_v54 }
 0x22d   : > { %818 = vmatmul.f32.gmra.mxu3 %v3202_v10  ;;  %1546 = vmatmul.f32.gmra.mxu1 %v1473_v29  ;;  %v3206_v28 = vadd.f32 %v1076_v62, %v984_v2  ;;  %v3217_v62 = vld [vmem:[#allocation2 + $0xba] sm:$0xff] }
 0x22e   : > { %1676 = vmatmul.f32.vlgmr.msra.gmra.mxu2 %v2894_v1  ;;  %v3230_v29 = vpop.f32.mrf.mxu1 }
 0x230   : > { %v771_v47 = vpop.f32.mrf.mxu3 }
 0x231   : > { %v831_v45 = vadd.f32 %v771_v47, %v642_v36  ;;  %v1085_v3 = vpop.f32.mrf.mxu2  ;;  %v650_v36 = vpop.f32.mrf.mxu0 }
 0x233   : > { %v985_v63 = vadd.f32 %v3056_v43, %v831_v45 }
 0x235   : > { %821 = vmatmul.f32.gmra.mxu3 %v3217_v62  ;;  %1549 = vmatmul.f32.gmra.mxu1 %v1474_v7  ;;  %v3221_v26 = vadd.f32 %v1079_v50, %v985_v63  ;;  %v648_v50 = vadd.f32 %v3146_v55, %v2828_v22 }
 0x236   : > { %1679 = vmatmul.f32.gmra.mxu2 %v2905_v4  ;;  %v3241_v47 = vpop.f32.mrf.mxu1 }
 0x238   : > { %v774_v18 = vpop.f32.mrf.mxu3 }
 0x239   : > { %v832_v56 = vadd.f32 %v774_v18, %v645_v60  ;;  %v1088_v43 = vpop.f32.mrf.mxu2  ;;  %v1478_v60 = vld [vmem:[#allocation2 + $0x89] sm:$0xff] }
 0x23b   : > { %v986_v6 = vadd.f32 %v3077_v19, %v832_v56  ;;  %v1476_v19 = vld [vmem:[#allocation2 + $0x79] sm:$0xff] }
 0x23d   : > { %1214 = vmatmul.f32.vlgmr.msra.gmra.mxu3 %v2859_v37  ;;  %1552 = vmatmul.f32.gmra.mxu1 %v1475_v21  ;;  %v3228_v2 = vadd.f32 %v1082_v20, %v986_v6  ;;  %v651_v20 = vadd.f32 %v650_v36, %v2845_v17  ;;  %v1479_v21 = vld [vmem:[#allocation2 + $0x91] sm:$0xff]  ;;  %v3501_v36 = vld [vmem:[#allocation22_spill] sm:$0xff] }
 0x23e   : > { %1682 = vmatmul.f32.gmra.mxu2 %v2922_v57  ;;  %v3250_v54 = vpop.f32.mrf.mxu1 }
 0x240   : > { %v777_v13 = vpop.f32.mrf.mxu3 }
 0x241   : > { %v833_v51 = vadd.f32 %v777_v13, %v648_v50  ;;  %v1091_v14 = vpop.f32.mrf.mxu2  ;;  %v3500_v50 = vld [vmem:[#allocation13_spill] sm:$0xff] }
 0x243   : > { %v987_v8 = vadd.f32 %v3089_v24, %v833_v51 }
 0x245   : > { %1217 = vmatmul.f32.gmra.mxu3 %v2878_v33  ;;  %1555 = vmatmul.f32.gmra.mxu1 %v1476_v19  ;;  %v3237_v37 = vadd.f32 %v1085_v3, %v987_v8  ;;  %v3498_v33 = vld [vmem:[#allocation12_spill] sm:$0xff]  ;;  %v1480_v8 = vld [vmem:[#allocation2 + $0x99] sm:$0xff] }
 0x246   : > { %1685 = vmatmul.f32.gmra.mxu2 %v2938_v48  ;;  %v654_v3 = vadd.f32 %v3498_v33, %v2856_v49  ;;  %v3260_v6 = vpop.f32.mrf.mxu1  ;;  %v3502_v19 = vld [vmem:[#allocation16_spill] sm:$0xff]  ;;  %v1481_v33 = vld [vmem:[#allocation2 + $0xa1] sm:$0xff] }
 0x248   : > { %v780_v9 = vpop.f32.mrf.mxu3 }
 0x249   : > { %v834_v22 = vadd.f32 %v780_v9, %v651_v20  ;;  %v1094_v55 = vpop.f32.mrf.mxu2  ;;  %v3503_v20 = vld [vmem:[#allocation14_spill] sm:$0xff] }
 0x24a   : > { %v663_v9 = vadd.f32 %v3503_v20, %v3502_v19  ;;  %v1484_v19 = vld [vmem:[#allocation2 + $0xb9] sm:$0xff] }
 0x24b   : > { %v988_v45 = vadd.f32 %v3108_v35, %v834_v22  ;;  %v657_v35 = vadd.f32 %v2853_v15, %v2875_v44  ;;  %v3510_v20 = vld [vmem:[#allocation30_spill] sm:$0xff] }
 0x24d   : > { %1220 = vmatmul.f32.gmra.mxu3 %v2894_v1  ;;  %1558 = vmatmul.f32.gmra.mxu1 %v1477_v27  ;;  %v3245_v24 = vadd.f32 %v1088_v43, %v988_v45 }
 0x24e   : > { %1688 = vmatmul.f32.gmra.mxu2 %v2954_v12 }
 0x250   : > { %v783_v63 = vpop.f32.mrf.mxu3 }
 0x251   : > { %v835_v17 = vadd.f32 %v783_v63, %v654_v3  ;;  %v1097_v7 = vpop.f32.mrf.mxu2 }
 0x253   : > { %v989_v34 = vadd.f32 %v3133_v61, %v835_v17  ;;  %v3499_v61 = vld [vmem:[#allocation15_spill] sm:$0xff]  ;;  %v3505_v17 = vld [vmem:[#allocation17_spill] sm:$0xff] }
 0x254   : > { %v660_v13 = vadd.f32 %v3500_v50, %v3499_v61  ;;  %v1483_v50 = vld [vmem:[#allocation2 + $0xb1] sm:$0xff] }
 0x255   : > { %1223 = vmatmul.f32.gmra.mxu3 %v2905_v4  ;;  %1561 = vmatmul.f32.gmra.mxu1 %v1478_v60  ;;  %v3254_v1 = vadd.f32 %v1091_v14, %v989_v34 }
 0x256   : > { %1691 = vmatmul.f32.gmra.mxu2 %v2982_v39 }
 0x258   : > { %v786_v18 = vpop.f32.mrf.mxu3 }
 0x259   : > { %v836_v49 = vadd.f32 %v786_v18, %v657_v35  ;;  %v1100_v56 = vpop.f32.mrf.mxu2  ;;  %v1482_v35 = vld [vmem:[#allocation2 + $0xa9] sm:$0xff] }
 0x25b   : > { %v990_v43 = vadd.f32 %v3159_v16, %v836_v49  ;;  %v3507_v49 = vld [vmem:[#allocation18_spill] sm:$0xff] }
 0x25d   : > { %1226 = vmatmul.f32.gmra.mxu3 %v2922_v57  ;;  %1564 = vmatmul.f32.gmra.mxu1 %v1479_v21  ;;  %v3263_v4 = vadd.f32 %v1094_v55, %v990_v43  ;;  %v3272_v57 = vpop.f32.mrf.mxu1 }
 0x25e   : > { %1694 = vmatmul.f32.gmra.mxu2 %v3010_v46 }
 0x260   : > { %v789_v51 = vpop.f32.mrf.mxu3 }
 0x261   : > { %v837_v15 = vadd.f32 %v789_v51, %v660_v13  ;;  %v1103_v44 = vpop.f32.mrf.mxu2  ;;  %v3508_v13 = vld [vmem:[#allocation28_spill] sm:$0xff]  ;;  %v3509_v51 = vld [vmem:[#allocation19_spill] sm:$0xff] }
 0x263   : > { %v991_v14 = vadd.f32 %v3180_v5, %v837_v15  ;;  %v3504_v5 = vld [vmem:[#allocation24_spill] sm:$0xff] }
 0x265   : > { %1229 = vmatmul.f32.gmra.mxu3 %v2938_v48  ;;  %1567 = vmatmul.f32.gmra.mxu1 %v1480_v8  ;;  %v3270_v16 = vadd.f32 %v1097_v7, %v991_v14  ;;  %v3282_v3 = vpop.f32.mrf.mxu1 }
 0x266   : > { %1697 = vmatmul.f32.gmra.mxu2 %v3501_v36 }
 0x268   : > { %v792_v22 = vpop.f32.mrf.mxu3 }
 0x269   : > { %v838_v55 = vadd.f32 %v792_v22, %v663_v9  ;;  %v1106_v45 = vpop.f32.mrf.mxu2  ;;  %v3511_v9 = vld [vmem:[#allocation20_spill] sm:$0xff] }
 0x26b   : > { %v992_v27 = vadd.f32 %v3198_v31, %v838_v55 }
 0x26d   : > { %1232 = vmatmul.f32.gmra.mxu3 %v2954_v12  ;;  %1570 = vmatmul.f32.gmra.mxu1 %v1481_v33  ;;  %v3279_v48 = vadd.f32 %v1100_v56, %v992_v27  ;;  %v3506_v12 = vld [vmem:[#allocation26_spill] sm:$0xff]  ;;  %v970_v21 = vpop.f32.mrf.mxu1  ;;  %v3512_v33 = vld [vmem:[#allocation21_spill] sm:$0xff] }
 0x26e   : > { %1700 = vmatmul.f32.gmra.mxu2 %v3504_v5 }
 0x270   : > { %v795_v63 = vpop.f32.mrf.mxu3 }
 0x271   : > { %v839_v7 = vadd.f32 %v795_v63, %v3505_v17  ;;  %v1109_v34 = vpop.f32.mrf.mxu2 }
 0x273   : > { %v993_v60 = vadd.f32 %v3215_v23, %v839_v7 }
 0x275   : > { %1235 = vmatmul.f32.gmra.mxu3 %v2982_v39  ;;  %1573 = vmatmul.f32.gmra.mxu1 %v1482_v35  ;;  %v3287_v31 = vadd.f32 %v1103_v44, %v993_v60  ;;  %v973_v8 = vpop.f32.mrf.mxu1  ;;  %v3513_v60 = vld [vmem:[#allocation23_spill] sm:$0xff] }
 0x276   : > { %1703 = vmatmul.f32.gmra.mxu2 %v3506_v12 }
 0x278   : > { %v798_v18 = vpop.f32.mrf.mxu3 }
 0x279   : > { %v840_v56 = vadd.f32 %v798_v18, %v3507_v49  ;;  %v1112_v43 = vpop.f32.mrf.mxu2 }
 0x27b   : > { %v994_v61 = vadd.f32 %v3230_v29, %v840_v56  ;;  %v1487_v56 = vld [vmem:[#allocation2 + $0xd1] sm:$0xff] }
 0x27d   : > { %1238 = vmatmul.f32.gmra.mxu3 %v3010_v46  ;;  %1576 = vmatmul.f32.gmra.mxu1 %v1483_v50  ;;  %v3293_v23 = vadd.f32 %v1106_v45, %v994_v61  ;;  %v976_v27 = vpop.f32.mrf.mxu1 }
 0x27e   : > { %1706 = vmatmul.f32.gmra.mxu2 %v3508_v13 }
 0x280   : > { %v801_v39 = vpop.f32.mrf.mxu3 }
 0x281   : > { %v841_v15 = vadd.f32 %v801_v39, %v3509_v51  ;;  %v1115_v44 = vpop.f32.mrf.mxu2 }
 0x283   : > { %v995_v14 = vadd.f32 %v3241_v47, %v841_v15  ;;  %v1488_v15 = vld [vmem:[#allocation2 + $0xd9] sm:$0xff] }
 0x285   : > { %1241 = vmatmul.f32.gmra.mxu3 %v3501_v36  ;;  %1579 = vmatmul.f32.gmra.mxu1 %v1484_v19  ;;  %v3299_v29 = vadd.f32 %v1109_v34, %v995_v14 }
 0x286   : > { %1709 = vmatmul.f32.gmra.mxu2 %v3510_v20 }
 0x288   : > { %v804_v46 = vpop.f32.mrf.mxu3 }
 0x289   : > { %v842_v22 = vadd.f32 %v804_v46, %v3511_v9  ;;  %v1118_v55 = vpop.f32.mrf.mxu2 }
 0x28b   : > { %v996_v45 = vadd.f32 %v3250_v54, %v842_v22 }
 0x28d   : > { %1244 = vmatmul.f32.gmra.mxu3 %v3504_v5  ;;  %1582 = vmatmul.f32.gmra.mxu1 %v3172_v58  ;;  %v3306_v47 = vadd.f32 %v1112_v43, %v996_v45  ;;  %v1369_v58 = vpop.f32.mrf.mxu0  ;;  %v1523_v5 = vpop.f32.mrf.mxu1  ;;  %v3514_v43 = vld [vmem:[#allocation25_spill] sm:$0xff] }
 0x28e   : > { %1712 = vmatmul.f32.gmra.mxu2 %v3100_v25 }
 0x290   : > { %v807_v36 = vpop.f32.mrf.mxu3 }
 0x291   : > { %v843_v63 = vadd.f32 %v807_v36, %v3512_v33  ;;  %v1121_v17 = vpop.f32.mrf.mxu2 }
 0x293   : > { %v997_v7 = vadd.f32 %v3260_v6, %v843_v63 }
 0x295   : > { %1247 = vmatmul.f32.gmra.mxu3 %v3506_v12  ;;  %1585 = vmatmul.f32.gmra.mxu1 %v3185_v53  ;;  %v3313_v54 = vadd.f32 %v1115_v44, %v997_v7  ;;  %v1372_v12 = vpop.f32.mrf.mxu0  ;;  %v1526_v39 = vpop.f32.mrf.mxu1  ;;  %v3515_v44 = vld [vmem:[#allocation27_spill] sm:$0xff] }
 0x296   : > { %1715 = vmatmul.f32.gmra.mxu2 %v3112_v59 }
 0x298   : > { %v810_v34 = vpop.f32.mrf.mxu3 }
 0x299   : > { %v844_v35 = vadd.f32 %v810_v34, %v3513_v60  ;;  %v1124_v18 = vpop.f32.mrf.mxu2  ;;  %v3517_v34 = vld [vmem:[#allocation31_spill] sm:$0xff] }
 0x29b   : > { %v998_v49 = vadd.f32 %v3272_v57, %v844_v35 }
 0x29d   : > { %1250 = vmatmul.f32.gmra.mxu3 %v3508_v13  ;;  %1588 = vmatmul.f32.gmra.mxu1 %v1487_v56  ;;  %v3319_v6 = vadd.f32 %v1118_v55, %v998_v49  ;;  %v1375_v46 = vpop.f32.mrf.mxu0  ;;  %v1529_v22 = vpop.f32.mrf.mxu1 }
 0x29e   : > { %1718 = vmatmul.f32.gmra.mxu2 %v3135_v41 }
 0x2a0   : > { %v813_v53 = vpop.f32.mrf.mxu3 }
 0x2a1   : > { %v845_v61 = vadd.f32 %v813_v53, %v3514_v43  ;;  %v1127_v50 = vpop.f32.mrf.mxu2 }
 0x2a3   : > { %v999_v51 = vadd.f32 %v3282_v3, %v845_v61 }
 0x2a5   : > { %1253 = vmatmul.f32.gmra.mxu3 %v3510_v20  ;;  %1591 = vmatmul.f32.gmra.mxu1 %v1488_v15  ;;  %v3325_v57 = vadd.f32 %v1121_v17, %v999_v51  ;;  %v3516_v20 = vld [vmem:[#allocation29_spill] sm:$0xff]  ;;  %v1378_v63 = vpop.f32.mrf.mxu0  ;;  %v1532_v7 = vpop.f32.mrf.mxu1 }
 0x2a6   : > { %1721 = vmatmul.f32.gmra.mxu2 %v3154_v52 }
 0x2a8   : > { %v816_v13 = vpop.f32.mrf.mxu3 }
 0x2a9   : > { %v846_v14 = vadd.f32 %v816_v13, %v3515_v44  ;;  %v1130_v19 = vpop.f32.mrf.mxu2 }
 0x2ab   : > { %v1000_v9 = vadd.f32 %v970_v21, %v846_v14  ;;  %v1639_v14 = vld [vmem:[#allocation2 + $0xc2] sm:$0xff] }
 0x2ad   : > { %1256 = vmatmul.f32.gmra.mxu3 %v3100_v25  ;;  %v3330_v55 = vadd.f32 %v1124_v18, %v1000_v9  ;;  %v1535_v49 = vpop.f32.mrf.mxu1 }
 0x2ae   : > { %1724 = vmatmul.f32.gmra.mxu2 %v3168_v0 }
 0x2b0   : > { %v819_v3 = vpop.f32.mrf.mxu3 }
 0x2b1   : > { %v847_v45 = vadd.f32 %v819_v3, %v3516_v20  ;;  %v1677_v36 = vpop.f32.mrf.mxu2 }
 0x2b3   : > { %v1001_v33 = vadd.f32 %v973_v8, %v847_v45  ;;  %v1381_v8 = vpop.f32.mrf.mxu0 }
 0x2b5   : > { %1259 = vmatmul.f32.gmra.mxu3 %v3112_v59  ;;  %v3335_v17 = vadd.f32 %v1127_v50, %v1001_v33  ;;  %v3347_v50 = vld [vmem:[%s3439_s4] ss:$0 sm:$0xff] }
 0x2b6   : > { %1727 = vmatmul.f32.gmra.mxu2 %v3187_v40 }
 0x2b8   : > { %v822_v21 = vpop.f32.mrf.mxu3 }
 0x2b9   : > { %v848_v25 = vadd.f32 %v822_v21, %v3517_v34  ;;  %v1680_v60 = vpop.f32.mrf.mxu2 }
 0x2bb   : > { %v1002_v35 = vadd.f32 %v976_v27, %v848_v25  ;;  %v1384_v51 = vpop.f32.mrf.mxu0 }
 0x2bd   : > { %1262 = vmatmul.f32.gmra.mxu3 %v3135_v41  ;;  %v3340_v18 = vadd.f32 %v1130_v19, %v1002_v35 }
 0x2be   : > { %1730 = vmatmul.f32.gmra.mxu2 %v3202_v10 }
 0x2c0   : > { %v1215_v59 = vpop.f32.mrf.mxu3 }
 0x2c1   : > { %v1287_v56 = vadd.f32 %v1215_v59, %v3121_v42  ;;  %v1683_v53 = vpop.f32.mrf.mxu2 }
 0x2c3   : > { %v1441_v43 = vadd.f32 %v1369_v58, %v1287_v56  ;;  %v1538_v58 = vpop.f32.mrf.mxu1  ;;  %v1387_v45 = vpop.f32.mrf.mxu0 }
 0x2c5   : > { %v1595_v61 = vadd.f32 %v1523_v5, %v1441_v43  ;;  %1265 = vmatmul.f32.gmra.mxu3 %v3154_v52 }
 0x2c6   : > { %1733 = vmatmul.f32.gmra.mxu2 %v3217_v62 }
 0x2c7   : > { %v1749_v41 = vadd.f32 %v1677_v36, %v1595_v61 }
 0x2c8   : > { %v1218_v27 = vpop.f32.mrf.mxu3 }
 0x2c9   : > { %v1777_v15 = vadd.f32 %v3347_v50, %v1749_v41  ;;  %v1288_v42 = vadd.f32 %v1218_v27, %v3141_v38  ;;  %v1686_v13 = vpop.f32.mrf.mxu2 }
 0x2cb   : > { %v1801_v5 = vmax.f32 %v1777_v15, 0.0  ;;  %v1442_v52 = vadd.f32 %v1372_v12, %v1288_v42  ;;  %v1541_v21 = vpop.f32.mrf.mxu1  ;;  %v1390_v56 = vpop.f32.mrf.mxu0 }
 0x2cd   : > { %1825 = vst [vmem:[%s3357_s8] sm:$0xff] %v1801_v5  ;;  %v1596_v44 = vadd.f32 %v1526_v39, %v1442_v52  ;;  %1268 = vmatmul.f32.gmra.mxu3 %v3168_v0  ;;  %v1640_v39 = vld [vmem:[#allocation2 + $0xca] sm:$0xff] }
 0x2ce   : > { %1736 = vmatmul.f32.gmra.mxu2 %v1639_v14 }
 0x2cf   : > { %v1750_v19 = vadd.f32 %v1680_v60, %v1596_v44 }
 0x2d0   : > { %v1221_v9 = vpop.f32.mrf.mxu3 }
 0x2d1   : > { %v1778_v38 = vadd.f32 %v3347_v50, %v1750_v19  ;;  %v1289_v3 = vadd.f32 %v1221_v9, %v3157_v30  ;;  %v1689_v20 = vpop.f32.mrf.mxu2 }
 0x2d3   : > { %v1802_v36 = vmax.f32 %v1778_v38, 0.0  ;;  %v1443_v33 = vadd.f32 %v1375_v46, %v1289_v3  ;;  %v1544_v43 = vpop.f32.mrf.mxu1 }
 0x2d5   : > { %1826 = vst [vmem:[%s3357_s8 + $0x8] sm:$0xff] %v1802_v36  ;;  %v1597_v12 = vadd.f32 %v1529_v22, %v1443_v33  ;;  %1271 = vmatmul.f32.gmra.mxu3 %v3187_v40  ;;  %v1641_v22 = vld [vmem:[#allocation2 + $0xd2] sm:$0xff] }
 0x2d6   : > { %1739 = vmatmul.f32.gmra.mxu2 %v1640_v39 }
 0x2d7   : > { %v1751_v0 = vadd.f32 %v1683_v53, %v1597_v12 }
 0x2d8   : > { %v1224_v34 = vpop.f32.mrf.mxu3 }
 0x2d9   : > { %v1779_v25 = vadd.f32 %v3347_v50, %v1751_v0  ;;  %v1290_v60 = vadd.f32 %v1224_v34, %v3174_v32  ;;  %v1692_v35 = vpop.f32.mrf.mxu2 }
 0x2db   : > { %v1803_v30 = vmax.f32 %v1779_v25, 0.0  ;;  %v1444_v59 = vadd.f32 %v1378_v63, %v1290_v60  ;;  %v1547_v5 = vpop.f32.mrf.mxu1 }
 0x2dd   : > { %1827 = vst [vmem:[%s3357_s8 + $0x10] sm:$0xff] %v1803_v30  ;;  %v1598_v46 = vadd.f32 %v1532_v7, %v1444_v59  ;;  %1274 = vmatmul.f32.gmra.mxu3 %v3202_v10  ;;  %v1642_v7 = vld [vmem:[#allocation2 + $0xda] sm:$0xff]  ;;  %v1393_v10 = vpop.f32.mrf.mxu0 }
 0x2de   : > { %1742 = vmatmul.f32.gmra.mxu2 %v1641_v22  ;;  %v1334_v59 = vld [vmem:[#allocation2 + $0xd8] sm:$0xff] }
 0x2df   : > { %v1752_v40 = vadd.f32 %v1686_v13, %v1598_v46 }
 0x2e0   : > { %v1227_v61 = vpop.f32.mrf.mxu3 }
 0x2e1   : > { %v1780_v53 = vadd.f32 %v3347_v50, %v1752_v40  ;;  %v1291_v41 = vadd.f32 %v1227_v61, %v3191_v11  ;;  %v1695_v27 = vpop.f32.mrf.mxu2 }
 0x2e3   : > { %v1804_v32 = vmax.f32 %v1780_v53, 0.0  ;;  %v1445_v15 = vadd.f32 %v1381_v8, %v1291_v41  ;;  %v1550_v33 = vpop.f32.mrf.mxu1 }
 0x2e5   : > { %1828 = vst [vmem:[%s3357_s8 + $0x18] sm:$0xff] %v1804_v32  ;;  %v1599_v63 = vadd.f32 %v1535_v49, %v1445_v15  ;;  %1277 = vmatmul.f32.gmra.mxu3 %v3217_v62  ;;  %v1396_v62 = vpop.f32.mrf.mxu0 }
 0x2e6   : > { %1745 = vmatmul.f32.gmra.mxu2 %v1642_v7 }
 0x2e7   : > { %v1753_v42 = vadd.f32 %v1689_v20, %v1599_v63 }
 0x2e8   : > { %v1230_v52 = vpop.f32.mrf.mxu3 }
 0x2e9   : > { %v1781_v13 = vadd.f32 %v3347_v50, %v1753_v42  ;;  %v1292_v44 = vadd.f32 %v1230_v52, %v3206_v28  ;;  %v1698_v11 = vpop.f32.mrf.mxu2 }
 0x2eb   : > { %v1805_v19 = vmax.f32 %v1781_v13, 0.0  ;;  %v1446_v9 = vadd.f32 %v1384_v51, %v1292_v44 }
 0x2ed   : > { %1829 = vst [vmem:[%s3357_s8 + $0x20] sm:$0xff] %v1805_v19  ;;  %v1600_v8 = vadd.f32 %v1538_v58, %v1446_v9  ;;  %1280 = vmatmul.f32.gmra.mxu3 %v1639_v14  ;;  %v1399_v60 = vpop.f32.mrf.mxu0 }
 0x2ef   : > { %v1754_v49 = vadd.f32 %v1692_v35, %v1600_v8 }
 0x2f0   : > { %v1233_v38 = vpop.f32.mrf.mxu3 }
 0x2f1   : > { %v1782_v3 = vadd.f32 %v3347_v50, %v1754_v49  ;;  %v1293_v20 = vadd.f32 %v1233_v38, %v3221_v26  ;;  %v1701_v36 = vpop.f32.mrf.mxu2  ;;  %v1553_v26 = vpop.f32.mrf.mxu1 }
 0x2f3   : > { %v1806_v12 = vmax.f32 %v1782_v3, 0.0  ;;  %v1447_v0 = vadd.f32 %v1387_v45, %v1293_v20 }
 0x2f5   : > { %1830 = vst [vmem:[%s3357_s8 + $0x28] sm:$0xff] %v1806_v12  ;;  %v1601_v28 = vadd.f32 %v1541_v21, %v1447_v0  ;;  %1283 = vmatmul.f32.gmra.mxu3 %v1640_v39  ;;  %v1402_v53 = vpop.f32.mrf.mxu0 }
 0x2f7   : > { %v1755_v34 = vadd.f32 %v1695_v27, %v1601_v28 }
 0x2f8   : > { %v1236_v51 = vpop.f32.mrf.mxu3 }
 0x2f9   : > { %v1783_v58 = vadd.f32 %v3347_v50, %v1755_v34  ;;  %v1294_v14 = vadd.f32 %v1236_v51, %v3228_v2  ;;  %v1704_v25 = vpop.f32.mrf.mxu2  ;;  %v1556_v27 = vpop.f32.mrf.mxu1 }
 0x2fb   : > { %v1807_v35 = vmax.f32 %v1783_v58, 0.0  ;;  %v1448_v30 = vadd.f32 %v1390_v56, %v1294_v14 }
 0x2fd   : > { %1831 = vst [vmem:[%s3357_s8 + $0x30] sm:$0xff] %v1807_v35  ;;  %v1602_v46 = vadd.f32 %v1544_v43, %v1448_v30  ;;  %1437 = vmatmul.f32.vlgmr.msrb.gmra.mxu3 %v1334_v59 }
 0x2ff   : > { %v1756_v45 = vadd.f32 %v1698_v11, %v1602_v46 }
 0x300   : > { %v1239_v22 = vpop.f32.mrf.mxu3 }
 0x301   : > { %v1784_v21 = vadd.f32 %v3347_v50, %v1756_v45  ;;  %v1295_v39 = vadd.f32 %v1239_v22, %v3237_v37  ;;  %v1707_v40 = vpop.f32.mrf.mxu2  ;;  %v1405_v37 = vpop.f32.mrf.mxu0 }
 0x302   : > { %v1559_v44 = vpop.f32.mrf.mxu1 }
 0x303   : > { %v1808_v61 = vmax.f32 %v1784_v21, 0.0  ;;  %v1449_v2 = vadd.f32 %v1393_v10, %v1295_v39 }
 0x305   : > { %1832 = vst [vmem:[%s3357_s8 + $0x38] sm:$0xff] %v1808_v61  ;;  %v1603_v41 = vadd.f32 %v1547_v5, %v1449_v2 }
 0x307   : > { %v1757_v56 = vadd.f32 %v1701_v36, %v1603_v41 }
 0x308   : > { %v1242_v32 = vpop.f32.mrf.mxu3 }
 0x309   : > { %v1785_v15 = vadd.f32 %v3347_v50, %v1757_v56  ;;  %v1296_v43 = vadd.f32 %v1242_v32, %v3245_v24  ;;  %v1710_v63 = vpop.f32.mrf.mxu2  ;;  %v1408_v3 = vpop.f32.mrf.mxu0 }
 0x30a   : > { %v1562_v36 = vpop.f32.mrf.mxu1 }
 0x30b   : > { %v1809_v7 = vmax.f32 %v1785_v15, 0.0  ;;  %v1450_v42 = vadd.f32 %v1396_v62, %v1296_v43 }
 0x30d   : > { %1833 = vst [vmem:[%s3357_s8 + $0x40] sm:$0xff] %v1809_v7  ;;  %v1604_v52 = vadd.f32 %v1550_v33, %v1450_v42 }
 0x30f   : > { %v1758_v13 = vadd.f32 %v1704_v25, %v1604_v52 }
 0x310   : > { %v1245_v10 = vpop.f32.mrf.mxu3 }
 0x311   : > { %v1786_v11 = vadd.f32 %v3347_v50, %v1758_v13  ;;  %v1297_v5 = vadd.f32 %v1245_v10, %v3254_v1  ;;  %v1713_v19 = vpop.f32.mrf.mxu2  ;;  %v1411_v14 = vpop.f32.mrf.mxu0 }
 0x312   : > { %v1565_v35 = vpop.f32.mrf.mxu1 }
 0x313   : > { %v1810_v9 = vmax.f32 %v1786_v11, 0.0  ;;  %v1451_v8 = vadd.f32 %v1399_v60, %v1297_v5 }
 0x315   : > { %1834 = vst [vmem:[%s3357_s8 + $0x48] sm:$0xff] %v1810_v9  ;;  %v1605_v49 = vadd.f32 %v1553_v26, %v1451_v8 }
 0x317   : > { %v1759_v24 = vadd.f32 %v1707_v40, %v1605_v49 }
 0x318   : > { %v1248_v38 = vpop.f32.mrf.mxu3 }
 0x319   : > { %v1787_v62 = vadd.f32 %v3347_v50, %v1759_v24  ;;  %v1298_v20 = vadd.f32 %v1248_v38, %v3263_v4  ;;  %v1716_v0 = vpop.f32.mrf.mxu2  ;;  %v1414_v39 = vpop.f32.mrf.mxu0 }
 0x31b   : > { %v1811_v33 = vmax.f32 %v1787_v62, 0.0  ;;  %v1452_v12 = vadd.f32 %v1402_v53, %v1298_v20 }
 0x31d   : > { %1835 = vst [vmem:[%s3357_s8 + $0x50] sm:$0xff] %v1811_v33  ;;  %v1606_v28 = vadd.f32 %v1556_v27, %v1452_v12 }
 0x31f   : > { %v1760_v1 = vadd.f32 %v1710_v63, %v1606_v28 }
 0x320   : > { %v1251_v34 = vpop.f32.mrf.mxu3 }
 0x321   : > { %v1788_v51 = vadd.f32 %v3347_v50, %v1760_v1  ;;  %v1299_v58 = vadd.f32 %v1251_v34, %v3270_v16  ;;  %v1719_v4 = vpop.f32.mrf.mxu2  ;;  %v1568_v16 = vpop.f32.mrf.mxu1 }
 0x322   : > { %v1417_v43 = vpop.f32.mrf.mxu0 }
 0x323   : > { %v1812_v25 = vmax.f32 %v1788_v51, 0.0  ;;  %v1453_v60 = vadd.f32 %v1405_v37, %v1299_v58 }
 0x325   : > { %1836 = vst [vmem:[%s3357_s8 + $0x58] sm:$0xff] %v1812_v25  ;;  %v1607_v30 = vadd.f32 %v1559_v44, %v1453_v60 }
 0x327   : > { %v1761_v26 = vadd.f32 %v1713_v19, %v1607_v30 }
 0x328   : > { %v1254_v59 = vpop.f32.mrf.mxu3 }
 0x329   : > { %v1789_v46 = vadd.f32 %v3347_v50, %v1761_v26  ;;  %v1300_v45 = vadd.f32 %v1254_v59, %v3279_v48  ;;  %v1722_v53 = vpop.f32.mrf.mxu2  ;;  %v1571_v63 = vpop.f32.mrf.mxu1 }
 0x32a   : > { %v1420_v5 = vpop.f32.mrf.mxu0 }
 0x32b   : > { %v1813_v22 = vmax.f32 %v1789_v46, 0.0  ;;  %v1454_v21 = vadd.f32 %v1408_v3, %v1300_v45 }
 0x32d   : > { %1837 = vst [vmem:[%s3357_s8 + $0x60] sm:$0xff] %v1813_v22  ;;  %v1608_v40 = vadd.f32 %v1562_v36, %v1454_v21 }
 0x32f   : > { %v1762_v61 = vadd.f32 %v1716_v0, %v1608_v40 }
 0x330   : > { %v1257_v2 = vpop.f32.mrf.mxu3 }
 0x331   : > { %v1790_v41 = vadd.f32 %v3347_v50, %v1762_v61  ;;  %v1301_v27 = vadd.f32 %v1257_v2, %v3287_v31  ;;  %v1725_v37 = vpop.f32.mrf.mxu2  ;;  %v1574_v8 = vpop.f32.mrf.mxu1 }
 0x332   : > { %v1423_v33 = vpop.f32.mrf.mxu0 }
 0x333   : > { %v1814_v56 = vmax.f32 %v1790_v41, 0.0  ;;  %v1455_v32 = vadd.f32 %v1411_v14, %v1301_v27 }
 0x335   : > { %1838 = vst [vmem:[%s3357_s8 + $0x68] sm:$0xff] %v1814_v56  ;;  %v1609_v15 = vadd.f32 %v1565_v35, %v1455_v32 }
 0x337   : > { %v1763_v48 = vadd.f32 %v1719_v4, %v1609_v15 }
 0x338   : > { %v1260_v7 = vpop.f32.mrf.mxu3 }
 0x339   : > { %v1791_v42 = vadd.f32 %v3347_v50, %v1763_v48  ;;  %v1302_v52 = vadd.f32 %v1260_v7, %v3293_v23  ;;  %v1728_v38 = vpop.f32.mrf.mxu2  ;;  %v1577_v28 = vpop.f32.mrf.mxu1 }
 0x33a   : > { %v1426_v35 = vpop.f32.mrf.mxu0 }
 0x33b   : > { %v1815_v13 = vmax.f32 %v1791_v42, 0.0  ;;  %v1456_v44 = vadd.f32 %v1414_v39, %v1302_v52 }
 0x33d   : > { %1839 = vst [vmem:[%s3357_s8 + $0x70] sm:$0xff] %v1815_v13  ;;  %v1610_v10 = vadd.f32 %v1568_v16, %v1456_v44 }
 0x33f   : > { %v1764_v11 = vadd.f32 %v1722_v53, %v1610_v10 }
 0x340   : > { %v1263_v31 = vpop.f32.mrf.mxu3 }
 0x341   : > { %v1792_v19 = vadd.f32 %v3347_v50, %v1764_v11  ;;  %v1303_v9 = vadd.f32 %v1263_v31, %v3299_v29  ;;  %v1731_v29 = vpop.f32.mrf.mxu2 }
 0x342   : > { %v1429_v40 = vpop.f32.mrf.mxu0 }
 0x343   : > { %v1816_v49 = vmax.f32 %v1792_v19, 0.0  ;;  %v1457_v24 = vadd.f32 %v1417_v43, %v1303_v9 }
 0x345   : > { %1840 = vst [vmem:[%s3357_s8 + $0x78] sm:$0xff] %v1816_v49  ;;  %v1611_v3 = vadd.f32 %v1571_v63, %v1457_v24 }
 0x347   : > { %v1765_v23 = vadd.f32 %v1725_v37, %v1611_v3 }
 0x348   : > { %v1266_v62 = vpop.f32.mrf.mxu3 }
 0x349   : > { %v1793_v20 = vadd.f32 %v3347_v50, %v1765_v23  ;;  %v1304_v36 = vadd.f32 %v1266_v62, %v3306_v47  ;;  %v1580_v47 = vpop.f32.mrf.mxu1  ;;  %v1734_v26 = vpop.f32.mrf.mxu2 }
 0x34b   : > { %v1817_v12 = vmax.f32 %v1793_v20, 0.0  ;;  %v1458_v0 = vadd.f32 %v1420_v5, %v1304_v36 }
 0x34d   : > { %1841 = vst [vmem:[%s3357_s8 + $0x80] sm:$0xff] %v1817_v12  ;;  %v1612_v1 = vadd.f32 %v1574_v8, %v1458_v0 }
 0x34f   : > { %v1766_v34 = vadd.f32 %v1728_v38, %v1612_v1 }
 0x350   : > { %v1269_v51 = vpop.f32.mrf.mxu3 }
 0x351   : > { %v1794_v58 = vadd.f32 %v3347_v50, %v1766_v34  ;;  %v1305_v14 = vadd.f32 %v1269_v51, %v3313_v54  ;;  %v1583_v16 = vpop.f32.mrf.mxu1  ;;  %v1737_v41 = vpop.f32.mrf.mxu2 }
 0x353   : > { %v1818_v25 = vmax.f32 %v1794_v58, 0.0  ;;  %v1459_v60 = vadd.f32 %v1423_v33, %v1305_v14 }
 0x355   : > { %1842 = vst [vmem:[%s3357_s8 + $0x88] sm:$0xff] %v1818_v25  ;;  %v1613_v30 = vadd.f32 %v1577_v28, %v1459_v60 }
 0x357   : > { %v1767_v4 = vadd.f32 %v1731_v29, %v1613_v30 }
 0x358   : > { %v1272_v59 = vpop.f32.mrf.mxu3 }
 0x359   : > { %v1795_v46 = vadd.f32 %v3347_v50, %v1767_v4  ;;  %v1306_v45 = vadd.f32 %v1272_v59, %v3319_v6  ;;  %v1432_v6 = vpop.f32.mrf.mxu0  ;;  %v1586_v7 = vpop.f32.mrf.mxu1 }
 0x35a   : > { %v1740_v37 = vpop.f32.mrf.mxu2 }
 0x35b   : > { %v1819_v22 = vmax.f32 %v1795_v46, 0.0  ;;  %v1460_v21 = vadd.f32 %v1426_v35, %v1306_v45 }
 0x35d   : > { %1843 = vst [vmem:[%s3357_s8 + $0x90] sm:$0xff] %v1819_v22  ;;  %v1614_v39 = vadd.f32 %v1580_v47, %v1460_v21 }
 0x35f   : > { %v1768_v54 = vadd.f32 %v1734_v26, %v1614_v39 }
 0x360   : > { %v1275_v61 = vpop.f32.mrf.mxu3 }
 0x361   : > { %v1796_v2 = vadd.f32 %v3347_v50, %v1768_v54  ;;  %v1307_v53 = vadd.f32 %v1275_v61, %v3325_v57  ;;  %v1435_v31 = vpop.f32.mrf.mxu0  ;;  %v1589_v9 = vpop.f32.mrf.mxu1 }
 0x363   : > { %v1820_v27 = vmax.f32 %v1796_v2, 0.0  ;;  %v1461_v56 = vadd.f32 %v1429_v40, %v1307_v53 }
 0x365   : > { %1844 = vst [vmem:[%s3357_s8 + $0x98] sm:$0xff] %v1820_v27  ;;  %v1615_v32 = vadd.f32 %v1583_v16, %v1461_v56 }
 0x367   : > { %v1769_v15 = vadd.f32 %v1737_v41, %v1615_v32 }
 0x368   : > { %v1278_v43 = vpop.f32.mrf.mxu3 }
 0x369   : > { %v1797_v48 = vadd.f32 %v3347_v50, %v1769_v15  ;;  %v1308_v63 = vadd.f32 %v1278_v43, %v3330_v55  ;;  %v1743_v55 = vpop.f32.mrf.mxu2  ;;  %v1592_v36 = vpop.f32.mrf.mxu1 }
 0x36b   : > { %v1821_v42 = vmax.f32 %v1797_v48, 0.0  ;;  %v1462_v52 = vadd.f32 %v1432_v6, %v1308_v63 }
 0x36d   : > { %1845 = vst [vmem:[%s3357_s8 + $0xa0] sm:$0xff] %v1821_v42  ;;  %v1616_v13 = vadd.f32 %v1586_v7, %v1462_v52 }
 0x36f   : > { %v1770_v57 = vadd.f32 %v1740_v37, %v1616_v13 }
 0x370   : > { %v1281_v44 = vpop.f32.mrf.mxu3 }
 0x371   : > { %v1798_v10 = vadd.f32 %v3347_v50, %v1770_v57  ;;  %v1309_v11 = vadd.f32 %v1281_v44, %v3335_v17  ;;  %v1746_v33 = vpop.f32.mrf.mxu2 }
 0x373   : > { %v1822_v5 = vmax.f32 %v1798_v10, 0.0  ;;  %v1463_v19 = vadd.f32 %v1435_v31, %v1309_v11 }
 0x375   : > { %1846 = vst [vmem:[%s3357_s8 + $0xa8] sm:$0xff] %v1822_v5  ;;  %v1617_v8 = vadd.f32 %v1589_v9, %v1463_v19 }
 0x377   : > { %v1771_v49 = vadd.f32 %v1743_v55, %v1617_v8 }
 0x378   : > { %v1284_v24 = vpop.f32.mrf.mxu3 }
 0x379   : > { %v1799_v38 = vadd.f32 %v3347_v50, %v1771_v49  ;;  %v1310_v23 = vadd.f32 %v1284_v24, %v3340_v18 }
 0x37b   : > { %v1823_v3 = vmax.f32 %v1799_v38, 0.0 }
 0x37d   : > { %1847 = vst [vmem:[%s3357_s8 + $0xb0] sm:$0xff] %v1823_v3 }
 0x380   : > { %v1438_v62 = vpop.f32.mrf.mxu3 }
 0x381   : > { %v1464_v20 = vadd.f32 %v1438_v62, %v1310_v23 }
 0x383   : > { %v1618_v17 = vadd.f32 %v1592_v36, %v1464_v20 }
 0x385   : > { %v1772_v12 = vadd.f32 %v1746_v33, %v1618_v17 }
 0x387   : > { %v1800_v0 = vadd.f32 %v3347_v50, %v1772_v12 }
 0x389   : > { %v1824_v28 = vmax.f32 %v1800_v0, 0.0 }
 0x38b   : > { %1848 = vst [vmem:[%s3357_s8 + $0xb8] sm:$0xff] %v1824_v28 }
 0x38c PF: > { %s15_s18 = sadd.s32 1, %s2107_s18  }
 0x38d   : > { %p12_p4 = scmp.ge.s32.totalorder %s15_s18, 4  }
 0x38f   :  { %14 = sbr.rel (!%p12_p4) target bundleno = 1 (0x1), region = 78 }

</bundles_post_ra>
